<compile_context>
chip_gen: v5e
topology: v5e:2x2
jax: 0.10.0
libtpu: 0.0.40
codegen_flags: <defaults>
</compile_context>

<pallas_src>
import functools
import math

import jax
import jax.numpy as jnp
import numpy as np
from jax import lax
from jax.experimental import pallas as pl
from jax.experimental.pallas import tpu as pltpu

LN_EPS = 1e-5  # nn.LayerNorm default


# --------------------------------------------------------------------------
# In-kernel helpers
# --------------------------------------------------------------------------
def _layernorm(x, gamma, beta):
    mu = jnp.mean(x, axis=-1, keepdims=True)
    var = jnp.mean(jnp.square(x - mu), axis=-1, keepdims=True)
    return (x - mu) * lax.rsqrt(var + LN_EPS) * gamma + beta


# --------------------------------------------------------------------------
# Fused per-layer kernel (one grid step = one batch element)
# --------------------------------------------------------------------------
def _layer_kernel(x_ref,
                  g1_ref, be1_ref,            # attention LayerNorm (1, D) f32
                  wq_ref, wk_ref, wv_ref,     # (H, D, dh) bf16
                  wo_ref, bo_ref,             # (H, dh, D) bf16, (1, D) f32
                  g2_ref, be2_ref,            # FFN LayerNorm (1, D) f32
                  w1_ref, b1_ref,             # (D, F) bf16, (1, F) f32
                  w2_ref, b2_ref,             # (F, D) bf16, (1, D) f32
                  gf_ref, bf_ref,             # final LayerNorm (used on last layer)
                  o_ref,
                  *, heads, dim_head, apply_final_ln):
    f32 = jnp.float32
    bf16 = jnp.bfloat16

    x = x_ref[0]                              # (N, D) float32
    n, d = x.shape
    scale = f32(dim_head ** (-0.5))

    # ------------------ Attention (pre-norm) ------------------
    xn = _layernorm(x, g1_ref[...], be1_ref[...])
    xh = jnp.broadcast_to(xn.astype(bf16)[None], (heads, n, d))   # (H, N, D)

    # Head-as-batch projections: batched (N,D)@(D,dh) matmuls, bf16 in / f32 acc.
    q = jnp.einsum("hnd,hdk->hnk", xh, wq_ref[...], preferred_element_type=f32)
    k = jnp.einsum("hnd,hdk->hnk", xh, wk_ref[...], preferred_element_type=f32)
    v = jnp.einsum("hnd,hdk->hnk", xh, wv_ref[...], preferred_element_type=f32)

    dots = jnp.einsum("hnk,hmk->hnm", q.astype(bf16), k.astype(bf16),
                      preferred_element_type=f32) * scale          # (H, N, N)
    m = jnp.max(dots, axis=-1, keepdims=True)
    e = jnp.exp(dots - m)
    attn = e * pl.reciprocal(jnp.sum(e, axis=-1, keepdims=True), approx=True)

    ctx = jnp.einsum("hnm,hmk->hnk", attn.astype(bf16), v.astype(bf16),
                     preferred_element_type=f32)                   # (H, N, dh)
    # Output projection: batched (N,dh)@(dh,D) then sum over heads
    # (== concat-heads @ W_out), avoids any in-kernel transpose.
    proj = jnp.einsum("hnk,hkd->hnd", ctx.astype(bf16), wo_ref[...],
                      preferred_element_type=f32)                  # (H, N, D)
    x = x + jnp.sum(proj, axis=0) + bo_ref[...]                    # residual

    # ------------------ FeedForward (pre-norm) ------------------
    xn2 = _layernorm(x, g2_ref[...], be2_ref[...])
    h = jnp.dot(xn2.astype(bf16), w1_ref[...],
                preferred_element_type=f32) + b1_ref[...]
    # Exact GELU (PyTorch nn.GELU default, approximate='none')
    h = 0.5 * h * (1.0 + lax.erf(h * f32(1.0 / math.sqrt(2.0))))
    y = jnp.dot(h.astype(bf16), w2_ref[...],
                preferred_element_type=f32) + b2_ref[...]
    x = x + y                                                      # residual

    if apply_final_ln:
        x = _layernorm(x, gf_ref[...], bf_ref[...])

    o_ref[0] = x.astype(o_ref.dtype)


# --------------------------------------------------------------------------
# pallas_call wrapper (one fused call per layer)
# --------------------------------------------------------------------------
def _const_spec(arr):
    nd = arr.ndim
    return pl.BlockSpec(arr.shape, lambda b, _nd=nd: (0,) * _nd)


def transformer_layer(x, layer_consts, *, heads, dim_head, apply_final_ln):
    B, N, D = x.shape
    kernel = functools.partial(_layer_kernel, heads=heads, dim_head=dim_head,
                               apply_final_ln=apply_final_ln)
    x_spec = pl.BlockSpec((1, N, D), lambda b: (b, 0, 0))
    return pl.pallas_call(
        kernel,
        out_shape=jax.ShapeDtypeStruct((B, N, D), x.dtype),
        grid=(B,),
        in_specs=[x_spec] + [_const_spec(c) for c in layer_consts],
        out_specs=x_spec,
        compiler_params=pltpu.CompilerParams(
            dimension_semantics=("parallel",),      # megacore across batch (v7x)
            vmem_limit_bytes=32 * 1024 * 1024,      # explicit scoped-VMEM budget
        ),
    )(x, *layer_consts)


@functools.partial(jax.jit, static_argnames=("heads", "dim_head"))
def transformer_forward(x, kparams, *, heads, dim_head):
    layers = kparams["layers"]
    depth = len(layers)
    for i, lp in enumerate(layers):
        consts = lp + (kparams["final_g"], kparams["final_b"])
        x = transformer_layer(x, consts, heads=heads, dim_head=dim_head,
                              apply_final_ln=(i == depth - 1))
    return x


# --------------------------------------------------------------------------
# Parameter init (reference layout, f32) + conversion to kernel layout (bf16)
# --------------------------------------------------------------------------
def init_params(key, dim, depth, heads, dim_head, mlp_dim):
    inner = heads * dim_head
    layers = []
    for _ in range(depth):
        key, *ks = jax.random.split(key, 12)
        attn_p = (
            1.0 + 0.05 * jax.random.normal(ks[0], (1, dim), jnp.float32),    # ln gamma
            0.01 * jax.random.normal(ks[1], (1, dim), jnp.float32),          # ln beta
            0.02 * jax.random.normal(ks[2], (dim, 3 * inner), jnp.float32),  # W_qkv
            0.02 * jax.random.normal(ks[3], (inner, dim), jnp.float32),      # W_out
            0.01 * jax.random.normal(ks[4], (1, dim), jnp.float32),          # b_out
        )
        ff_p = (
            1.0 + 0.05 * jax.random.normal(ks[5], (1, dim), jnp.float32),    # ln gamma
            0.01 * jax.random.normal(ks[6], (1, dim), jnp.float32),          # ln beta
            0.02 * jax.random.normal(ks[7], (dim, mlp_dim), jnp.float32),    # W1
            0.01 * jax.random.normal(ks[8], (1, mlp_dim), jnp.float32),      # b1
            0.02 * jax.random.normal(ks[9], (mlp_dim, dim), jnp.float32),    # W2
            0.01 * jax.random.normal(ks[10], (1, dim), jnp.float32),         # b2
        )
        layers.append((attn_p, ff_p))
    key, k1, k2 = jax.random.split(key, 3)
    return {
        "layers": layers,
        "final_g": 1.0 + 0.05 * jax.random.normal(k1, (1, dim), jnp.float32),
        "final_b": 0.01 * jax.random.normal(k2, (1, dim), jnp.float32),
    }


def prepare_kernel_params(params, heads, dim_head, compute_dtype=jnp.bfloat16):
    """Host-side reshape/cast: head axis moved to a batch dim, weights -> bf16."""
    inner = heads * dim_head
    layers = []
    for (g1, be1, wqkv, wout, bout), (g2, be2, w1, b1, w2, b2) in params["layers"]:
        D = wqkv.shape[0]

        def head_major(w2d):  # (D, inner) -> (heads, D, dim_head)
            return w2d.reshape(D, heads, dim_head).transpose(1, 0, 2)

        wq = head_major(wqkv[:, 0 * inner:1 * inner]).astype(compute_dtype)
        wk = head_major(wqkv[:, 1 * inner:2 * inner]).astype(compute_dtype)
        wv = head_major(wqkv[:, 2 * inner:3 * inner]).astype(compute_dtype)
        wo = wout.reshape(heads, dim_head, D).astype(compute_dtype)
        layers.append((
            g1, be1,
            wq, wk, wv,
            wo, bout,
            g2, be2,
            w1.astype(compute_dtype), b1,
            w2.astype(compute_dtype), b2,
        ))
    return {"layers": tuple(layers),
            "final_g": params["final_g"], "final_b": params["final_b"]}


# --------------------------------------------------------------------------
# Pure-JAX reference (mirrors the PyTorch forward, all f32)
# --------------------------------------------------------------------------
def reference_forward(x, params, heads, dim_head):
    def ln(x, g, b):
        mu = x.mean(-1, keepdims=True)
        var = ((x - mu) ** 2).mean(-1, keepdims=True)
        return (x - mu) / jnp.sqrt(var + LN_EPS) * g + b

    scale = dim_head ** (-0.5)
    for (g1, be1, wqkv, wout, bout), (g2, be2, w1, b1, w2, b2) in params["layers"]:
        B, N, D = x.shape
        xn = ln(x, g1, be1)
        qkv = xn @ wqkv
        q, k, v = jnp.split(qkv, 3, axis=-1)
        sh = lambda t: t.reshape(B, N, heads, dim_head).transpose(0, 2, 1, 3)
        q, k, v = map(sh, (q, k, v))
        dots = jnp.einsum("bhnd,bhmd->bhnm", q, k) * scale
        attn = jax.nn.softmax(dots, axis=-1)
        out = jnp.einsum("bhnm,bhmd->bhnd", attn, v)
        out = out.transpose(0, 2, 1, 3).reshape(B, N, heads * dim_head)
        x = out @ wout + bout + x
        xn2 = ln(x, g2, be2)
        h = xn2 @ w1 + b1
        h = 0.5 * h * (1.0 + lax.erf(h / jnp.sqrt(2.0)))
        x = h @ w2 + b2 + x
    return ln(x, params["final_g"], params["final_b"])


# --------------------------------------------------------------------------
if __name__ == "__main__":
    # Small config consistent with the module's constructor.
    B, N = 2, 8
    dim, depth, heads, dim_head, mlp_dim = 32, 2, 4, 16, 64

    key = jax.random.PRNGKey(0)
    key, kx = jax.random.split(key)
    x = jax.random.normal(kx, (B, N, dim), jnp.float32)

    params = init_params(key, dim, depth, heads, dim_head, mlp_dim)
    kparams = prepare_kernel_params(params, heads, dim_head)

    out = transformer_forward(x, kparams, heads=heads, dim_head=dim_head)
    out = jax.block_until_ready(out)

    ref = reference_forward(x, params, heads, dim_head)
    # bf16 MXU inputs (f32 accumulation) => slightly looser tolerance than pure f32.
    np.testing.assert_allclose(np.asarray(out), np.asarray(ref), rtol=2e-2, atol=2e-2)

    print("KERNEL_OK")
</pallas_src>

<mosaic_0001>
module attributes {stable_mosaic.version = 11 : i64} {
  func.func @_layer_kernel(%arg0: i32, %arg1: memref<1x8x32xf32, #tpu.memory_space<vmem>>, %arg2: memref<1x32xf32, #tpu.memory_space<vmem>>, %arg3: memref<1x32xf32, #tpu.memory_space<vmem>>, %arg4: memref<4x32x16xbf16, #tpu.memory_space<vmem>>, %arg5: memref<4x32x16xbf16, #tpu.memory_space<vmem>>, %arg6: memref<4x32x16xbf16, #tpu.memory_space<vmem>>, %arg7: memref<4x16x32xbf16, #tpu.memory_space<vmem>>, %arg8: memref<1x32xf32, #tpu.memory_space<vmem>>, %arg9: memref<1x32xf32, #tpu.memory_space<vmem>>, %arg10: memref<1x32xf32, #tpu.memory_space<vmem>>, %arg11: memref<32x64xbf16, #tpu.memory_space<vmem>>, %arg12: memref<1x64xf32, #tpu.memory_space<vmem>>, %arg13: memref<64x32xbf16, #tpu.memory_space<vmem>>, %arg14: memref<1x32xf32, #tpu.memory_space<vmem>>, %arg15: memref<1x32xf32, #tpu.memory_space<vmem>>, %arg16: memref<1x32xf32, #tpu.memory_space<vmem>>, %arg17: memref<1x8x32xf32, #tpu.memory_space<vmem>>) attributes {dimension_semantics = [#tpu.dimension_semantics<parallel>], iteration_bounds = array<i64: 2>, scalar_prefetch = 0 : i64, scratch_operands = 0 : i64, tpu.core_type = #tpu.core_type<tc>, window_params = [{transform_indices = @transform_0, window_bounds = array<i64: 1, 8, 32>}, {pipeline_mode = #tpu.pipeline_mode<synchronous>, transform_indices = @transform_1, window_bounds = array<i64: 1, 32>}, {pipeline_mode = #tpu.pipeline_mode<synchronous>, transform_indices = @transform_2, window_bounds = array<i64: 1, 32>}, {pipeline_mode = #tpu.pipeline_mode<synchronous>, transform_indices = @transform_3, window_bounds = array<i64: 4, 32, 16>}, {pipeline_mode = #tpu.pipeline_mode<synchronous>, transform_indices = @transform_4, window_bounds = array<i64: 4, 32, 16>}, {pipeline_mode = #tpu.pipeline_mode<synchronous>, transform_indices = @transform_5, window_bounds = array<i64: 4, 32, 16>}, {pipeline_mode = #tpu.pipeline_mode<synchronous>, transform_indices = @transform_6, window_bounds = array<i64: 4, 16, 32>}, {pipeline_mode = #tpu.pipeline_mode<synchronous>, transform_indices = @transform_7, window_bounds = array<i64: 1, 32>}, {pipeline_mode = #tpu.pipeline_mode<synchronous>, transform_indices = @transform_8, window_bounds = array<i64: 1, 32>}, {pipeline_mode = #tpu.pipeline_mode<synchronous>, transform_indices = @transform_9, window_bounds = array<i64: 1, 32>}, {pipeline_mode = #tpu.pipeline_mode<synchronous>, transform_indices = @transform_10, window_bounds = array<i64: 32, 64>}, {pipeline_mode = #tpu.pipeline_mode<synchronous>, transform_indices = @transform_11, window_bounds = array<i64: 1, 64>}, {pipeline_mode = #tpu.pipeline_mode<synchronous>, transform_indices = @transform_12, window_bounds = array<i64: 64, 32>}, {pipeline_mode = #tpu.pipeline_mode<synchronous>, transform_indices = @transform_13, window_bounds = array<i64: 1, 32>}, {pipeline_mode = #tpu.pipeline_mode<synchronous>, transform_indices = @transform_14, window_bounds = array<i64: 1, 32>}, {pipeline_mode = #tpu.pipeline_mode<synchronous>, transform_indices = @transform_15, window_bounds = array<i64: 1, 32>}, {transform_indices = @transform_16, window_bounds = array<i64: 1, 8, 32>}]} {
    %c0 = arith.constant 0 : index
    %c0_0 = arith.constant 0 : index
    %c0_1 = arith.constant 0 : index
    %0 = vector.load %arg1[%c0, %c0_0, %c0_1] : memref<1x8x32xf32, #tpu.memory_space<vmem>>, vector<1x8x32xf32>
    %1 = vector.shape_cast %0 : vector<1x8x32xf32> to vector<8x32xf32>
    %c0_2 = arith.constant 0 : index
    %c0_3 = arith.constant 0 : index
    %2 = vector.load %arg2[%c0_2, %c0_3] : memref<1x32xf32, #tpu.memory_space<vmem>>, vector<1x32xf32>
    %c0_4 = arith.constant 0 : index
    %c0_5 = arith.constant 0 : index
    %3 = vector.load %arg3[%c0_4, %c0_5] : memref<1x32xf32, #tpu.memory_space<vmem>>, vector<1x32xf32>
    %cst = arith.constant dense<0.000000e+00> : vector<8xf32>
    %4 = vector.multi_reduction <add>, %1, %cst [1] : vector<8x32xf32> to vector<8xf32>
    %5 = vector.shape_cast %4 : vector<8xf32> to vector<8x1xf32>
    %cst_6 = arith.constant 3.200000e+01 : f32
    %6 = vector.broadcast %cst_6 : f32 to vector<8x1xf32>
    %7 = arith.divf %5, %6 : vector<8x1xf32>
    %8 = vector.broadcast %7 : vector<8x1xf32> to vector<8x32xf32>
    %9 = arith.subf %1, %8 : vector<8x32xf32>
    %10 = arith.mulf %9, %9 : vector<8x32xf32>
    %cst_7 = arith.constant dense<0.000000e+00> : vector<8xf32>
    %11 = vector.multi_reduction <add>, %10, %cst_7 [1] : vector<8x32xf32> to vector<8xf32>
    %12 = vector.shape_cast %11 : vector<8xf32> to vector<8x1xf32>
    %cst_8 = arith.constant 3.200000e+01 : f32
    %13 = vector.broadcast %cst_8 : f32 to vector<8x1xf32>
    %14 = arith.divf %12, %13 : vector<8x1xf32>
    %15 = vector.broadcast %7 : vector<8x1xf32> to vector<8x32xf32>
    %16 = arith.subf %1, %15 : vector<8x32xf32>
    %cst_9 = arith.constant 9.99999974E-6 : f32
    %17 = vector.broadcast %cst_9 : f32 to vector<8x1xf32>
    %18 = arith.addf %14, %17 : vector<8x1xf32>
    %19 = math.rsqrt %18 : vector<8x1xf32>
    %20 = vector.broadcast %19 : vector<8x1xf32> to vector<8x32xf32>
    %21 = arith.mulf %16, %20 : vector<8x32xf32>
    %22 = vector.broadcast %2 : vector<1x32xf32> to vector<8x32xf32>
    %23 = arith.mulf %21, %22 : vector<8x32xf32>
    %24 = vector.broadcast %3 : vector<1x32xf32> to vector<8x32xf32>
    %25 = arith.addf %23, %24 : vector<8x32xf32>
    %26 = arith.truncf %25 : vector<8x32xf32> to vector<8x32xbf16>
    %27 = vector.shape_cast %26 : vector<8x32xbf16> to vector<1x8x32xbf16>
    %28 = vector.shape_cast %27 : vector<1x8x32xbf16> to vector<1x8x32xbf16>
    %29 = vector.broadcast %28 : vector<1x8x32xbf16> to vector<4x8x32xbf16>
    %c0_10 = arith.constant 0 : index
    %c0_11 = arith.constant 0 : index
    %c0_12 = arith.constant 0 : index
    %30 = vector.load %arg4[%c0_10, %c0_11, %c0_12] : memref<4x32x16xbf16, #tpu.memory_space<vmem>>, vector<4x32x16xbf16>
    "tpu.trace_start"() <{level = 10 : i32, message = "hnd,hdk->hnk"}> : () -> ()
    %cst_13 = arith.constant dense<0.000000e+00> : vector<4x8x16xf32>
    %31 = tpu.matmul %29, %30, %cst_13 {dimension_numbers = #tpu.dot_dimension_numbers<[2], [1], [1], [2], [0, 0, 0, 1, 1, 2], [0], [0]>} : vector<4x8x32xbf16>, vector<4x32x16xbf16>, vector<4x8x16xf32> -> vector<4x8x16xf32>
    "tpu.trace_stop"() : () -> ()
    %c0_14 = arith.constant 0 : index
    %c0_15 = arith.constant 0 : index
    %c0_16 = arith.constant 0 : index
    %32 = vector.load %arg5[%c0_14, %c0_15, %c0_16] : memref<4x32x16xbf16, #tpu.memory_space<vmem>>, vector<4x32x16xbf16>
    "tpu.trace_start"() <{level = 10 : i32, message = "hnd,hdk->hnk"}> : () -> ()
    %cst_17 = arith.constant dense<0.000000e+00> : vector<4x8x16xf32>
    %33 = tpu.matmul %29, %32, %cst_17 {dimension_numbers = #tpu.dot_dimension_numbers<[2], [1], [1], [2], [0, 0, 0, 1, 1, 2], [0], [0]>} : vector<4x8x32xbf16>, vector<4x32x16xbf16>, vector<4x8x16xf32> -> vector<4x8x16xf32>
    "tpu.trace_stop"() : () -> ()
    %c0_18 = arith.constant 0 : index
    %c0_19 = arith.constant 0 : index
    %c0_20 = arith.constant 0 : index
    %34 = vector.load %arg6[%c0_18, %c0_19, %c0_20] : memref<4x32x16xbf16, #tpu.memory_space<vmem>>, vector<4x32x16xbf16>
    "tpu.trace_start"() <{level = 10 : i32, message = "hnd,hdk->hnk"}> : () -> ()
    %cst_21 = arith.constant dense<0.000000e+00> : vector<4x8x16xf32>
    %35 = tpu.matmul %29, %34, %cst_21 {dimension_numbers = #tpu.dot_dimension_numbers<[2], [1], [1], [2], [0, 0, 0, 1, 1, 2], [0], [0]>} : vector<4x8x32xbf16>, vector<4x32x16xbf16>, vector<4x8x16xf32> -> vector<4x8x16xf32>
    "tpu.trace_stop"() : () -> ()
    %36 = arith.truncf %31 : vector<4x8x16xf32> to vector<4x8x16xbf16>
    %37 = arith.truncf %33 : vector<4x8x16xf32> to vector<4x8x16xbf16>
    "tpu.trace_start"() <{level = 10 : i32, message = "hnk,hmk->hnm"}> : () -> ()
    %cst_22 = arith.constant dense<0.000000e+00> : vector<4x8x8xf32>
    %38 = tpu.matmul %36, %37, %cst_22 {dimension_numbers = #tpu.dot_dimension_numbers<[2], [2], [1], [1], [0, 0, 0, 1, 1, 1], [0], [0]>} : vector<4x8x16xbf16>, vector<4x8x16xbf16>, vector<4x8x8xf32> -> vector<4x8x8xf32>
    "tpu.trace_stop"() : () -> ()
    %cst_23 = arith.constant 2.500000e-01 : f32
    %39 = vector.broadcast %cst_23 : f32 to vector<4x8x8xf32>
    %40 = arith.mulf %38, %39 : vector<4x8x8xf32>
    %cst_24 = arith.constant dense<0xFF800000> : vector<4x8xf32>
    %41 = vector.multi_reduction <maximumf>, %40, %cst_24 [2] : vector<4x8x8xf32> to vector<4x8xf32>
    %42 = vector.shape_cast %41 : vector<4x8xf32> to vector<4x8x1xf32>
    %43 = vector.broadcast %42 : vector<4x8x1xf32> to vector<4x8x8xf32>
    %44 = arith.subf %40, %43 : vector<4x8x8xf32>
    %45 = math.exp %44 : vector<4x8x8xf32>
    %cst_25 = arith.constant dense<0.000000e+00> : vector<4x8xf32>
    %46 = vector.multi_reduction <add>, %45, %cst_25 [2] : vector<4x8x8xf32> to vector<4x8xf32>
    %47 = vector.shape_cast %46 : vector<4x8xf32> to vector<4x8x1xf32>
    %48 = tpu.reciprocal %47 {approx = true} : vector<4x8x1xf32> -> vector<4x8x1xf32>
    %49 = vector.broadcast %48 : vector<4x8x1xf32> to vector<4x8x8xf32>
    %50 = arith.mulf %45, %49 : vector<4x8x8xf32>
    %51 = arith.truncf %50 : vector<4x8x8xf32> to vector<4x8x8xbf16>
    %52 = arith.truncf %35 : vector<4x8x16xf32> to vector<4x8x16xbf16>
    "tpu.trace_start"() <{level = 10 : i32, message = "hnm,hmk->hnk"}> : () -> ()
    %cst_26 = arith.constant dense<0.000000e+00> : vector<4x8x16xf32>
    %53 = tpu.matmul %51, %52, %cst_26 {dimension_numbers = #tpu.dot_dimension_numbers<[2], [1], [1], [2], [0, 0, 0, 1, 1, 2], [0], [0]>} : vector<4x8x8xbf16>, vector<4x8x16xbf16>, vector<4x8x16xf32> -> vector<4x8x16xf32>
    "tpu.trace_stop"() : () -> ()
    %54 = arith.truncf %53 : vector<4x8x16xf32> to vector<4x8x16xbf16>
    %c0_27 = arith.constant 0 : index
    %c0_28 = arith.constant 0 : index
    %c0_29 = arith.constant 0 : index
    %55 = vector.load %arg7[%c0_27, %c0_28, %c0_29] : memref<4x16x32xbf16, #tpu.memory_space<vmem>>, vector<4x16x32xbf16>
    "tpu.trace_start"() <{level = 10 : i32, message = "hnk,hkd->hnd"}> : () -> ()
    %cst_30 = arith.constant dense<0.000000e+00> : vector<4x8x32xf32>
    %56 = tpu.matmul %54, %55, %cst_30 {dimension_numbers = #tpu.dot_dimension_numbers<[2], [1], [1], [2], [0, 0, 0, 1, 1, 2], [0], [0]>} : vector<4x8x16xbf16>, vector<4x16x32xbf16>, vector<4x8x32xf32> -> vector<4x8x32xf32>
    "tpu.trace_stop"() : () -> ()
    %cst_31 = arith.constant dense<0.000000e+00> : vector<8x32xf32>
    %57 = vector.multi_reduction <add>, %56, %cst_31 [0] : vector<4x8x32xf32> to vector<8x32xf32>
    %58 = arith.addf %1, %57 : vector<8x32xf32>
    %c0_32 = arith.constant 0 : index
    %c0_33 = arith.constant 0 : index
    %59 = vector.load %arg8[%c0_32, %c0_33] : memref<1x32xf32, #tpu.memory_space<vmem>>, vector<1x32xf32>
    %60 = vector.broadcast %59 : vector<1x32xf32> to vector<8x32xf32>
    %61 = arith.addf %58, %60 : vector<8x32xf32>
    %c0_34 = arith.constant 0 : index
    %c0_35 = arith.constant 0 : index
    %62 = vector.load %arg9[%c0_34, %c0_35] : memref<1x32xf32, #tpu.memory_space<vmem>>, vector<1x32xf32>
    %c0_36 = arith.constant 0 : index
    %c0_37 = arith.constant 0 : index
    %63 = vector.load %arg10[%c0_36, %c0_37] : memref<1x32xf32, #tpu.memory_space<vmem>>, vector<1x32xf32>
    %cst_38 = arith.constant dense<0.000000e+00> : vector<8xf32>
    %64 = vector.multi_reduction <add>, %61, %cst_38 [1] : vector<8x32xf32> to vector<8xf32>
    %65 = vector.shape_cast %64 : vector<8xf32> to vector<8x1xf32>
    %cst_39 = arith.constant 3.200000e+01 : f32
    %66 = vector.broadcast %cst_39 : f32 to vector<8x1xf32>
    %67 = arith.divf %65, %66 : vector<8x1xf32>
    %68 = vector.broadcast %67 : vector<8x1xf32> to vector<8x32xf32>
    %69 = arith.subf %61, %68 : vector<8x32xf32>
    %70 = arith.mulf %69, %69 : vector<8x32xf32>
    %cst_40 = arith.constant dense<0.000000e+00> : vector<8xf32>
    %71 = vector.multi_reduction <add>, %70, %cst_40 [1] : vector<8x32xf32> to vector<8xf32>
    %72 = vector.shape_cast %71 : vector<8xf32> to vector<8x1xf32>
    %cst_41 = arith.constant 3.200000e+01 : f32
    %73 = vector.broadcast %cst_41 : f32 to vector<8x1xf32>
    %74 = arith.divf %72, %73 : vector<8x1xf32>
    %75 = vector.broadcast %67 : vector<8x1xf32> to vector<8x32xf32>
    %76 = arith.subf %61, %75 : vector<8x32xf32>
    %cst_42 = arith.constant 9.99999974E-6 : f32
    %77 = vector.broadcast %cst_42 : f32 to vector<8x1xf32>
    %78 = arith.addf %74, %77 : vector<8x1xf32>
    %79 = math.rsqrt %78 : vector<8x1xf32>
    %80 = vector.broadcast %79 : vector<8x1xf32> to vector<8x32xf32>
    %81 = arith.mulf %76, %80 : vector<8x32xf32>
    %82 = vector.broadcast %62 : vector<1x32xf32> to vector<8x32xf32>
    %83 = arith.mulf %81, %82 : vector<8x32xf32>
    %84 = vector.broadcast %63 : vector<1x32xf32> to vector<8x32xf32>
    %85 = arith.addf %83, %84 : vector<8x32xf32>
    %86 = arith.truncf %85 : vector<8x32xf32> to vector<8x32xbf16>
    %c0_43 = arith.constant 0 : index
    %c0_44 = arith.constant 0 : index
    %87 = vector.load %arg11[%c0_43, %c0_44] : memref<32x64xbf16, #tpu.memory_space<vmem>>, vector<32x64xbf16>
    %cst_45 = arith.constant dense<0.000000e+00> : vector<8x64xf32>
    %88 = tpu.matmul %86, %87, %cst_45 {dimension_numbers = #tpu.dot_dimension_numbers<[1], [0], [0], [1], [0, 0, 1, 1], [], []>} : vector<8x32xbf16>, vector<32x64xbf16>, vector<8x64xf32> -> vector<8x64xf32>
    %c0_46 = arith.constant 0 : index
    %c0_47 = arith.constant 0 : index
    %89 = vector.load %arg12[%c0_46, %c0_47] : memref<1x64xf32, #tpu.memory_space<vmem>>, vector<1x64xf32>
    %90 = vector.broadcast %89 : vector<1x64xf32> to vector<8x64xf32>
    %91 = arith.addf %88, %90 : vector<8x64xf32>
    %cst_48 = arith.constant 5.000000e-01 : f32
    %92 = vector.broadcast %cst_48 : f32 to vector<8x64xf32>
    %93 = arith.mulf %92, %91 : vector<8x64xf32>
    %cst_49 = arith.constant 0.707106769 : f32
    %94 = vector.broadcast %cst_49 : f32 to vector<8x64xf32>
    %95 = arith.mulf %91, %94 : vector<8x64xf32>
    %96 = math.erf %95 : vector<8x64xf32>
    %cst_50 = arith.constant 1.000000e+00 : f32
    %97 = vector.broadcast %cst_50 : f32 to vector<8x64xf32>
    %98 = arith.addf %97, %96 : vector<8x64xf32>
    %99 = arith.mulf %93, %98 : vector<8x64xf32>
    %100 = arith.truncf %99 : vector<8x64xf32> to vector<8x64xbf16>
    %c0_51 = arith.constant 0 : index
    %c0_52 = arith.constant 0 : index
    %101 = vector.load %arg13[%c0_51, %c0_52] : memref<64x32xbf16, #tpu.memory_space<vmem>>, vector<64x32xbf16>
    %cst_53 = arith.constant dense<0.000000e+00> : vector<8x32xf32>
    %102 = tpu.matmul %100, %101, %cst_53 {dimension_numbers = #tpu.dot_dimension_numbers<[1], [0], [0], [1], [0, 0, 1, 1], [], []>} : vector<8x64xbf16>, vector<64x32xbf16>, vector<8x32xf32> -> vector<8x32xf32>
    %c0_54 = arith.constant 0 : index
    %c0_55 = arith.constant 0 : index
    %103 = vector.load %arg14[%c0_54, %c0_55] : memref<1x32xf32, #tpu.memory_space<vmem>>, vector<1x32xf32>
    %104 = vector.broadcast %103 : vector<1x32xf32> to vector<8x32xf32>
    %105 = arith.addf %102, %104 : vector<8x32xf32>
    %106 = arith.addf %61, %105 : vector<8x32xf32>
    %c0_56 = arith.constant 0 : index
    %c0_57 = arith.constant 0 : index
    %c0_58 = arith.constant 0 : index
    %107 = vector.load %arg17[%c0_56, %c0_57, %c0_58] : memref<1x8x32xf32, #tpu.memory_space<vmem>>, vector<1x8x32xf32>
    %108 = vector.shape_cast %107 : vector<1x8x32xf32> to vector<8x32xf32>
    %109 = vector.shape_cast %106 : vector<8x32xf32> to vector<1x8x32xf32>
    tpu.vector_store %arg17[%c0_56, %c0_57, %c0_58], %109 {strides = array<i32>} : memref<1x8x32xf32, #tpu.memory_space<vmem>>, vector<1x8x32xf32>,
    return
  }
  func.func @transform_0(%arg0: i32) -> (i32, i32, i32) {
    %c0_i32 = arith.constant 0 : i32
    %c0_i32_0 = arith.constant 0 : i32
    %c0_i32_1 = arith.constant 0 : i32
    return %arg0, %c0_i32, %c0_i32_0 : i32, i32, i32
  }
  func.func @transform_1(%arg0: i32) -> (i32, i32) {
    %c0_i32 = arith.constant 0 : i32
    %c0_i32_0 = arith.constant 0 : i32
    %c0_i32_1 = arith.constant 0 : i32
    return %c0_i32, %c0_i32_0 : i32, i32
  }
  func.func @transform_2(%arg0: i32) -> (i32, i32) {
    %c0_i32 = arith.constant 0 : i32
    %c0_i32_0 = arith.constant 0 : i32
    %c0_i32_1 = arith.constant 0 : i32
    return %c0_i32, %c0_i32_0 : i32, i32
  }
  func.func @transform_3(%arg0: i32) -> (i32, i32, i32) {
    %c0_i32 = arith.constant 0 : i32
    %c0_i32_0 = arith.constant 0 : i32
    %c0_i32_1 = arith.constant 0 : i32
    %c0_i32_2 = arith.constant 0 : i32
    return %c0_i32, %c0_i32_0, %c0_i32_1 : i32, i32, i32
  }
  func.func @transform_4(%arg0: i32) -> (i32, i32, i32) {
    %c0_i32 = arith.constant 0 : i32
    %c0_i32_0 = arith.constant 0 : i32
    %c0_i32_1 = arith.constant 0 : i32
    %c0_i32_2 = arith.constant 0 : i32
    return %c0_i32, %c0_i32_0, %c0_i32_1 : i32, i32, i32
  }
  func.func @transform_5(%arg0: i32) -> (i32, i32, i32) {
    %c0_i32 = arith.constant 0 : i32
    %c0_i32_0 = arith.constant 0 : i32
    %c0_i32_1 = arith.constant 0 : i32
    %c0_i32_2 = arith.constant 0 : i32
    return %c0_i32, %c0_i32_0, %c0_i32_1 : i32, i32, i32
  }
  func.func @transform_6(%arg0: i32) -> (i32, i32, i32) {
    %c0_i32 = arith.constant 0 : i32
    %c0_i32_0 = arith.constant 0 : i32
    %c0_i32_1 = arith.constant 0 : i32
    %c0_i32_2 = arith.constant 0 : i32
    return %c0_i32, %c0_i32_0, %c0_i32_1 : i32, i32, i32
  }
  func.func @transform_7(%arg0: i32) -> (i32, i32) {
    %c0_i32 = arith.constant 0 : i32
    %c0_i32_0 = arith.constant 0 : i32
    %c0_i32_1 = arith.constant 0 : i32
    return %c0_i32, %c0_i32_0 : i32, i32
  }
  func.func @transform_8(%arg0: i32) -> (i32, i32) {
    %c0_i32 = arith.constant 0 : i32
    %c0_i32_0 = arith.constant 0 : i32
    %c0_i32_1 = arith.constant 0 : i32
    return %c0_i32, %c0_i32_0 : i32, i32
  }
  func.func @transform_9(%arg0: i32) -> (i32, i32) {
    %c0_i32 = arith.constant 0 : i32
    %c0_i32_0 = arith.constant 0 : i32
    %c0_i32_1 = arith.constant 0 : i32
    return %c0_i32, %c0_i32_0 : i32, i32
  }
  func.func @transform_10(%arg0: i32) -> (i32, i32) {
    %c0_i32 = arith.constant 0 : i32
    %c0_i32_0 = arith.constant 0 : i32
    %c0_i32_1 = arith.constant 0 : i32
    return %c0_i32, %c0_i32_0 : i32, i32
  }
  func.func @transform_11(%arg0: i32) -> (i32, i32) {
    %c0_i32 = arith.constant 0 : i32
    %c0_i32_0 = arith.constant 0 : i32
    %c0_i32_1 = arith.constant 0 : i32
    return %c0_i32, %c0_i32_0 : i32, i32
  }
  func.func @transform_12(%arg0: i32) -> (i32, i32) {
    %c0_i32 = arith.constant 0 : i32
    %c0_i32_0 = arith.constant 0 : i32
    %c0_i32_1 = arith.constant 0 : i32
    return %c0_i32, %c0_i32_0 : i32, i32
  }
  func.func @transform_13(%arg0: i32) -> (i32, i32) {
    %c0_i32 = arith.constant 0 : i32
    %c0_i32_0 = arith.constant 0 : i32
    %c0_i32_1 = arith.constant 0 : i32
    return %c0_i32, %c0_i32_0 : i32, i32
  }
  func.func @transform_14(%arg0: i32) -> (i32, i32) {
    %c0_i32 = arith.constant 0 : i32
    %c0_i32_0 = arith.constant 0 : i32
    %c0_i32_1 = arith.constant 0 : i32
    return %c0_i32, %c0_i32_0 : i32, i32
  }
  func.func @transform_15(%arg0: i32) -> (i32, i32) {
    %c0_i32 = arith.constant 0 : i32
    %c0_i32_0 = arith.constant 0 : i32
    %c0_i32_1 = arith.constant 0 : i32
    return %c0_i32, %c0_i32_0 : i32, i32
  }
  func.func @transform_16(%arg0: i32) -> (i32, i32, i32) {
    %c0_i32 = arith.constant 0 : i32
    %c0_i32_0 = arith.constant 0 : i32
    %c0_i32_1 = arith.constant 0 : i32
    return %arg0, %c0_i32, %c0_i32_0 : i32, i32, i32
  }
}

module attributes {stable_mosaic.version = 11 : i64} {
  func.func @_layer_kernel(%arg0: i32, %arg1: memref<1x8x32xf32, #tpu.memory_space<vmem>>, %arg2: memref<1x32xf32, #tpu.memory_space<vmem>>, %arg3: memref<1x32xf32, #tpu.memory_space<vmem>>, %arg4: memref<4x32x16xbf16, #tpu.memory_space<vmem>>, %arg5: memref<4x32x16xbf16, #tpu.memory_space<vmem>>, %arg6: memref<4x32x16xbf16, #tpu.memory_space<vmem>>, %arg7: memref<4x16x32xbf16, #tpu.memory_space<vmem>>, %arg8: memref<1x32xf32, #tpu.memory_space<vmem>>, %arg9: memref<1x32xf32, #tpu.memory_space<vmem>>, %arg10: memref<1x32xf32, #tpu.memory_space<vmem>>, %arg11: memref<32x64xbf16, #tpu.memory_space<vmem>>, %arg12: memref<1x64xf32, #tpu.memory_space<vmem>>, %arg13: memref<64x32xbf16, #tpu.memory_space<vmem>>, %arg14: memref<1x32xf32, #tpu.memory_space<vmem>>, %arg15: memref<1x32xf32, #tpu.memory_space<vmem>>, %arg16: memref<1x32xf32, #tpu.memory_space<vmem>>, %arg17: memref<1x8x32xf32, #tpu.memory_space<vmem>>) attributes {dimension_semantics = [#tpu.dimension_semantics<parallel>], iteration_bounds = array<i64: 2>, scalar_prefetch = 0 : i64, scratch_operands = 0 : i64, tpu.core_type = #tpu.core_type<tc>, window_params = [{transform_indices = @transform_0, window_bounds = array<i64: 1, 8, 32>}, {pipeline_mode = #tpu.pipeline_mode<synchronous>, transform_indices = @transform_1, window_bounds = array<i64: 1, 32>}, {pipeline_mode = #tpu.pipeline_mode<synchronous>, transform_indices = @transform_2, window_bounds = array<i64: 1, 32>}, {pipeline_mode = #tpu.pipeline_mode<synchronous>, transform_indices = @transform_3, window_bounds = array<i64: 4, 32, 16>}, {pipeline_mode = #tpu.pipeline_mode<synchronous>, transform_indices = @transform_4, window_bounds = array<i64: 4, 32, 16>}, {pipeline_mode = #tpu.pipeline_mode<synchronous>, transform_indices = @transform_5, window_bounds = array<i64: 4, 32, 16>}, {pipeline_mode = #tpu.pipeline_mode<synchronous>, transform_indices = @transform_6, window_bounds = array<i64: 4, 16, 32>}, {pipeline_mode = #tpu.pipeline_mode<synchronous>, transform_indices = @transform_7, window_bounds = array<i64: 1, 32>}, {pipeline_mode = #tpu.pipeline_mode<synchronous>, transform_indices = @transform_8, window_bounds = array<i64: 1, 32>}, {pipeline_mode = #tpu.pipeline_mode<synchronous>, transform_indices = @transform_9, window_bounds = array<i64: 1, 32>}, {pipeline_mode = #tpu.pipeline_mode<synchronous>, transform_indices = @transform_10, window_bounds = array<i64: 32, 64>}, {pipeline_mode = #tpu.pipeline_mode<synchronous>, transform_indices = @transform_11, window_bounds = array<i64: 1, 64>}, {pipeline_mode = #tpu.pipeline_mode<synchronous>, transform_indices = @transform_12, window_bounds = array<i64: 64, 32>}, {pipeline_mode = #tpu.pipeline_mode<synchronous>, transform_indices = @transform_13, window_bounds = array<i64: 1, 32>}, {pipeline_mode = #tpu.pipeline_mode<synchronous>, transform_indices = @transform_14, window_bounds = array<i64: 1, 32>}, {pipeline_mode = #tpu.pipeline_mode<synchronous>, transform_indices = @transform_15, window_bounds = array<i64: 1, 32>}, {transform_indices = @transform_16, window_bounds = array<i64: 1, 8, 32>}]} {
    %c0 = arith.constant 0 : index
    %c0_0 = arith.constant 0 : index
    %c0_1 = arith.constant 0 : index
    %0 = vector.load %arg1[%c0, %c0_0, %c0_1] : memref<1x8x32xf32, #tpu.memory_space<vmem>>, vector<1x8x32xf32>
    %1 = vector.shape_cast %0 : vector<1x8x32xf32> to vector<8x32xf32>
    %c0_2 = arith.constant 0 : index
    %c0_3 = arith.constant 0 : index
    %2 = vector.load %arg2[%c0_2, %c0_3] : memref<1x32xf32, #tpu.memory_space<vmem>>, vector<1x32xf32>
    %c0_4 = arith.constant 0 : index
    %c0_5 = arith.constant 0 : index
    %3 = vector.load %arg3[%c0_4, %c0_5] : memref<1x32xf32, #tpu.memory_space<vmem>>, vector<1x32xf32>
    %cst = arith.constant dense<0.000000e+00> : vector<8xf32>
    %4 = vector.multi_reduction <add>, %1, %cst [1] : vector<8x32xf32> to vector<8xf32>
    %5 = vector.shape_cast %4 : vector<8xf32> to vector<8x1xf32>
    %cst_6 = arith.constant 3.200000e+01 : f32
    %6 = vector.broadcast %cst_6 : f32 to vector<8x1xf32>
    %7 = arith.divf %5, %6 : vector<8x1xf32>
    %8 = vector.broadcast %7 : vector<8x1xf32> to vector<8x32xf32>
    %9 = arith.subf %1, %8 : vector<8x32xf32>
    %10 = arith.mulf %9, %9 : vector<8x32xf32>
    %cst_7 = arith.constant dense<0.000000e+00> : vector<8xf32>
    %11 = vector.multi_reduction <add>, %10, %cst_7 [1] : vector<8x32xf32> to vector<8xf32>
    %12 = vector.shape_cast %11 : vector<8xf32> to vector<8x1xf32>
    %cst_8 = arith.constant 3.200000e+01 : f32
    %13 = vector.broadcast %cst_8 : f32 to vector<8x1xf32>
    %14 = arith.divf %12, %13 : vector<8x1xf32>
    %15 = vector.broadcast %7 : vector<8x1xf32> to vector<8x32xf32>
    %16 = arith.subf %1, %15 : vector<8x32xf32>
    %cst_9 = arith.constant 9.99999974E-6 : f32
    %17 = vector.broadcast %cst_9 : f32 to vector<8x1xf32>
    %18 = arith.addf %14, %17 : vector<8x1xf32>
    %19 = math.rsqrt %18 : vector<8x1xf32>
    %20 = vector.broadcast %19 : vector<8x1xf32> to vector<8x32xf32>
    %21 = arith.mulf %16, %20 : vector<8x32xf32>
    %22 = vector.broadcast %2 : vector<1x32xf32> to vector<8x32xf32>
    %23 = arith.mulf %21, %22 : vector<8x32xf32>
    %24 = vector.broadcast %3 : vector<1x32xf32> to vector<8x32xf32>
    %25 = arith.addf %23, %24 : vector<8x32xf32>
    %26 = arith.truncf %25 : vector<8x32xf32> to vector<8x32xbf16>
    %27 = vector.shape_cast %26 : vector<8x32xbf16> to vector<1x8x32xbf16>
    %28 = vector.shape_cast %27 : vector<1x8x32xbf16> to vector<1x8x32xbf16>
    %29 = vector.broadcast %28 : vector<1x8x32xbf16> to vector<4x8x32xbf16>
    %c0_10 = arith.constant 0 : index
    %c0_11 = arith.constant 0 : index
    %c0_12 = arith.constant 0 : index
    %30 = vector.load %arg4[%c0_10, %c0_11, %c0_12] : memref<4x32x16xbf16, #tpu.memory_space<vmem>>, vector<4x32x16xbf16>
    "tpu.trace_start"() <{level = 10 : i32, message = "hnd,hdk->hnk"}> : () -> ()
    %cst_13 = arith.constant dense<0.000000e+00> : vector<4x8x16xf32>
    %31 = tpu.matmul %29, %30, %cst_13 {dimension_numbers = #tpu.dot_dimension_numbers<[2], [1], [1], [2], [0, 0, 0, 1, 1, 2], [0], [0]>} : vector<4x8x32xbf16>, vector<4x32x16xbf16>, vector<4x8x16xf32> -> vector<4x8x16xf32>
    "tpu.trace_stop"() : () -> ()
    %c0_14 = arith.constant 0 : index
    %c0_15 = arith.constant 0 : index
    %c0_16 = arith.constant 0 : index
    %32 = vector.load %arg5[%c0_14, %c0_15, %c0_16] : memref<4x32x16xbf16, #tpu.memory_space<vmem>>, vector<4x32x16xbf16>
    "tpu.trace_start"() <{level = 10 : i32, message = "hnd,hdk->hnk"}> : () -> ()
    %cst_17 = arith.constant dense<0.000000e+00> : vector<4x8x16xf32>
    %33 = tpu.matmul %29, %32, %cst_17 {dimension_numbers = #tpu.dot_dimension_numbers<[2], [1], [1], [2], [0, 0, 0, 1, 1, 2], [0], [0]>} : vector<4x8x32xbf16>, vector<4x32x16xbf16>, vector<4x8x16xf32> -> vector<4x8x16xf32>
    "tpu.trace_stop"() : () -> ()
    %c0_18 = arith.constant 0 : index
    %c0_19 = arith.constant 0 : index
    %c0_20 = arith.constant 0 : index
    %34 = vector.load %arg6[%c0_18, %c0_19, %c0_20] : memref<4x32x16xbf16, #tpu.memory_space<vmem>>, vector<4x32x16xbf16>
    "tpu.trace_start"() <{level = 10 : i32, message = "hnd,hdk->hnk"}> : () -> ()
    %cst_21 = arith.constant dense<0.000000e+00> : vector<4x8x16xf32>
    %35 = tpu.matmul %29, %34, %cst_21 {dimension_numbers = #tpu.dot_dimension_numbers<[2], [1], [1], [2], [0, 0, 0, 1, 1, 2], [0], [0]>} : vector<4x8x32xbf16>, vector<4x32x16xbf16>, vector<4x8x16xf32> -> vector<4x8x16xf32>
    "tpu.trace_stop"() : () -> ()
    %36 = arith.truncf %31 : vector<4x8x16xf32> to vector<4x8x16xbf16>
    %37 = arith.truncf %33 : vector<4x8x16xf32> to vector<4x8x16xbf16>
    "tpu.trace_start"() <{level = 10 : i32, message = "hnk,hmk->hnm"}> : () -> ()
    %cst_22 = arith.constant dense<0.000000e+00> : vector<4x8x8xf32>
    %38 = tpu.matmul %36, %37, %cst_22 {dimension_numbers = #tpu.dot_dimension_numbers<[2], [2], [1], [1], [0, 0, 0, 1, 1, 1], [0], [0]>} : vector<4x8x16xbf16>, vector<4x8x16xbf16>, vector<4x8x8xf32> -> vector<4x8x8xf32>
    "tpu.trace_stop"() : () -> ()
    %cst_23 = arith.constant 2.500000e-01 : f32
    %39 = vector.broadcast %cst_23 : f32 to vector<4x8x8xf32>
    %40 = arith.mulf %38, %39 : vector<4x8x8xf32>
    %cst_24 = arith.constant dense<0xFF800000> : vector<4x8xf32>
    %41 = vector.multi_reduction <maximumf>, %40, %cst_24 [2] : vector<4x8x8xf32> to vector<4x8xf32>
    %42 = vector.shape_cast %41 : vector<4x8xf32> to vector<4x8x1xf32>
    %43 = vector.broadcast %42 : vector<4x8x1xf32> to vector<4x8x8xf32>
    %44 = arith.subf %40, %43 : vector<4x8x8xf32>
    %45 = math.exp %44 : vector<4x8x8xf32>
    %cst_25 = arith.constant dense<0.000000e+00> : vector<4x8xf32>
    %46 = vector.multi_reduction <add>, %45, %cst_25 [2] : vector<4x8x8xf32> to vector<4x8xf32>
    %47 = vector.shape_cast %46 : vector<4x8xf32> to vector<4x8x1xf32>
    %48 = tpu.reciprocal %47 {approx = true} : vector<4x8x1xf32> -> vector<4x8x1xf32>
    %49 = vector.broadcast %48 : vector<4x8x1xf32> to vector<4x8x8xf32>
    %50 = arith.mulf %45, %49 : vector<4x8x8xf32>
    %51 = arith.truncf %50 : vector<4x8x8xf32> to vector<4x8x8xbf16>
    %52 = arith.truncf %35 : vector<4x8x16xf32> to vector<4x8x16xbf16>
    "tpu.trace_start"() <{level = 10 : i32, message = "hnm,hmk->hnk"}> : () -> ()
    %cst_26 = arith.constant dense<0.000000e+00> : vector<4x8x16xf32>
    %53 = tpu.matmul %51, %52, %cst_26 {dimension_numbers = #tpu.dot_dimension_numbers<[2], [1], [1], [2], [0, 0, 0, 1, 1, 2], [0], [0]>} : vector<4x8x8xbf16>, vector<4x8x16xbf16>, vector<4x8x16xf32> -> vector<4x8x16xf32>
    "tpu.trace_stop"() : () -> ()
    %54 = arith.truncf %53 : vector<4x8x16xf32> to vector<4x8x16xbf16>
    %c0_27 = arith.constant 0 : index
    %c0_28 = arith.constant 0 : index
    %c0_29 = arith.constant 0 : index
    %55 = vector.load %arg7[%c0_27, %c0_28, %c0_29] : memref<4x16x32xbf16, #tpu.memory_space<vmem>>, vector<4x16x32xbf16>
    "tpu.trace_start"() <{level = 10 : i32, message = "hnk,hkd->hnd"}> : () -> ()
    %cst_30 = arith.constant dense<0.000000e+00> : vector<4x8x32xf32>
    %56 = tpu.matmul %54, %55, %cst_30 {dimension_numbers = #tpu.dot_dimension_numbers<[2], [1], [1], [2], [0, 0, 0, 1, 1, 2], [0], [0]>} : vector<4x8x16xbf16>, vector<4x16x32xbf16>, vector<4x8x32xf32> -> vector<4x8x32xf32>
    "tpu.trace_stop"() : () -> ()
    %cst_31 = arith.constant dense<0.000000e+00> : vector<8x32xf32>
    %57 = vector.multi_reduction <add>, %56, %cst_31 [0] : vector<4x8x32xf32> to vector<8x32xf32>
    %58 = arith.addf %1, %57 : vector<8x32xf32>
    %c0_32 = arith.constant 0 : index
    %c0_33 = arith.constant 0 : index
    %59 = vector.load %arg8[%c0_32, %c0_33] : memref<1x32xf32, #tpu.memory_space<vmem>>, vector<1x32xf32>
    %60 = vector.broadcast %59 : vector<1x32xf32> to vector<8x32xf32>
    %61 = arith.addf %58, %60 : vector<8x32xf32>
    %c0_34 = arith.constant 0 : index
    %c0_35 = arith.constant 0 : index
    %62 = vector.load %arg9[%c0_34, %c0_35] : memref<1x32xf32, #tpu.memory_space<vmem>>, vector<1x32xf32>
    %c0_36 = arith.constant 0 : index
    %c0_37 = arith.constant 0 : index
    %63 = vector.load %arg10[%c0_36, %c0_37] : memref<1x32xf32, #tpu.memory_space<vmem>>, vector<1x32xf32>
    %cst_38 = arith.constant dense<0.000000e+00> : vector<8xf32>
    %64 = vector.multi_reduction <add>, %61, %cst_38 [1] : vector<8x32xf32> to vector<8xf32>
    %65 = vector.shape_cast %64 : vector<8xf32> to vector<8x1xf32>
    %cst_39 = arith.constant 3.200000e+01 : f32
    %66 = vector.broadcast %cst_39 : f32 to vector<8x1xf32>
    %67 = arith.divf %65, %66 : vector<8x1xf32>
    %68 = vector.broadcast %67 : vector<8x1xf32> to vector<8x32xf32>
    %69 = arith.subf %61, %68 : vector<8x32xf32>
    %70 = arith.mulf %69, %69 : vector<8x32xf32>
    %cst_40 = arith.constant dense<0.000000e+00> : vector<8xf32>
    %71 = vector.multi_reduction <add>, %70, %cst_40 [1] : vector<8x32xf32> to vector<8xf32>
    %72 = vector.shape_cast %71 : vector<8xf32> to vector<8x1xf32>
    %cst_41 = arith.constant 3.200000e+01 : f32
    %73 = vector.broadcast %cst_41 : f32 to vector<8x1xf32>
    %74 = arith.divf %72, %73 : vector<8x1xf32>
    %75 = vector.broadcast %67 : vector<8x1xf32> to vector<8x32xf32>
    %76 = arith.subf %61, %75 : vector<8x32xf32>
    %cst_42 = arith.constant 9.99999974E-6 : f32
    %77 = vector.broadcast %cst_42 : f32 to vector<8x1xf32>
    %78 = arith.addf %74, %77 : vector<8x1xf32>
    %79 = math.rsqrt %78 : vector<8x1xf32>
    %80 = vector.broadcast %79 : vector<8x1xf32> to vector<8x32xf32>
    %81 = arith.mulf %76, %80 : vector<8x32xf32>
    %82 = vector.broadcast %62 : vector<1x32xf32> to vector<8x32xf32>
    %83 = arith.mulf %81, %82 : vector<8x32xf32>
    %84 = vector.broadcast %63 : vector<1x32xf32> to vector<8x32xf32>
    %85 = arith.addf %83, %84 : vector<8x32xf32>
    %86 = arith.truncf %85 : vector<8x32xf32> to vector<8x32xbf16>
    %c0_43 = arith.constant 0 : index
    %c0_44 = arith.constant 0 : index
    %87 = vector.load %arg11[%c0_43, %c0_44] : memref<32x64xbf16, #tpu.memory_space<vmem>>, vector<32x64xbf16>
    %cst_45 = arith.constant dense<0.000000e+00> : vector<8x64xf32>
    %88 = tpu.matmul %86, %87, %cst_45 {dimension_numbers = #tpu.dot_dimension_numbers<[1], [0], [0], [1], [0, 0, 1, 1], [], []>} : vector<8x32xbf16>, vector<32x64xbf16>, vector<8x64xf32> -> vector<8x64xf32>
    %c0_46 = arith.constant 0 : index
    %c0_47 = arith.constant 0 : index
    %89 = vector.load %arg12[%c0_46, %c0_47] : memref<1x64xf32, #tpu.memory_space<vmem>>, vector<1x64xf32>
    %90 = vector.broadcast %89 : vector<1x64xf32> to vector<8x64xf32>
    %91 = arith.addf %88, %90 : vector<8x64xf32>
    %cst_48 = arith.constant 5.000000e-01 : f32
    %92 = vector.broadcast %cst_48 : f32 to vector<8x64xf32>
    %93 = arith.mulf %92, %91 : vector<8x64xf32>
    %cst_49 = arith.constant 0.707106769 : f32
    %94 = vector.broadcast %cst_49 : f32 to vector<8x64xf32>
    %95 = arith.mulf %91, %94 : vector<8x64xf32>
    %96 = math.erf %95 : vector<8x64xf32>
    %cst_50 = arith.constant 1.000000e+00 : f32
    %97 = vector.broadcast %cst_50 : f32 to vector<8x64xf32>
    %98 = arith.addf %97, %96 : vector<8x64xf32>
    %99 = arith.mulf %93, %98 : vector<8x64xf32>
    %100 = arith.truncf %99 : vector<8x64xf32> to vector<8x64xbf16>
    %c0_51 = arith.constant 0 : index
    %c0_52 = arith.constant 0 : index
    %101 = vector.load %arg13[%c0_51, %c0_52] : memref<64x32xbf16, #tpu.memory_space<vmem>>, vector<64x32xbf16>
    %cst_53 = arith.constant dense<0.000000e+00> : vector<8x32xf32>
    %102 = tpu.matmul %100, %101, %cst_53 {dimension_numbers = #tpu.dot_dimension_numbers<[1], [0], [0], [1], [0, 0, 1, 1], [], []>} : vector<8x64xbf16>, vector<64x32xbf16>, vector<8x32xf32> -> vector<8x32xf32>
    %c0_54 = arith.constant 0 : index
    %c0_55 = arith.constant 0 : index
    %103 = vector.load %arg14[%c0_54, %c0_55] : memref<1x32xf32, #tpu.memory_space<vmem>>, vector<1x32xf32>
    %104 = vector.broadcast %103 : vector<1x32xf32> to vector<8x32xf32>
    %105 = arith.addf %102, %104 : vector<8x32xf32>
    %106 = arith.addf %61, %105 : vector<8x32xf32>
    %c0_56 = arith.constant 0 : index
    %c0_57 = arith.constant 0 : index
    %107 = vector.load %arg15[%c0_56, %c0_57] : memref<1x32xf32, #tpu.memory_space<vmem>>, vector<1x32xf32>
    %c0_58 = arith.constant 0 : index
    %c0_59 = arith.constant 0 : index
    %108 = vector.load %arg16[%c0_58, %c0_59] : memref<1x32xf32, #tpu.memory_space<vmem>>, vector<1x32xf32>
    %cst_60 = arith.constant dense<0.000000e+00> : vector<8xf32>
    %109 = vector.multi_reduction <add>, %106, %cst_60 [1] : vector<8x32xf32> to vector<8xf32>
    %110 = vector.shape_cast %109 : vector<8xf32> to vector<8x1xf32>
    %cst_61 = arith.constant 3.200000e+01 : f32
    %111 = vector.broadcast %cst_61 : f32 to vector<8x1xf32>
    %112 = arith.divf %110, %111 : vector<8x1xf32>
    %113 = vector.broadcast %112 : vector<8x1xf32> to vector<8x32xf32>
    %114 = arith.subf %106, %113 : vector<8x32xf32>
    %115 = arith.mulf %114, %114 : vector<8x32xf32>
    %cst_62 = arith.constant dense<0.000000e+00> : vector<8xf32>
    %116 = vector.multi_reduction <add>, %115, %cst_62 [1] : vector<8x32xf32> to vector<8xf32>
    %117 = vector.shape_cast %116 : vector<8xf32> to vector<8x1xf32>
    %cst_63 = arith.constant 3.200000e+01 : f32
    %118 = vector.broadcast %cst_63 : f32 to vector<8x1xf32>
    %119 = arith.divf %117, %118 : vector<8x1xf32>
    %120 = vector.broadcast %112 : vector<8x1xf32> to vector<8x32xf32>
    %121 = arith.subf %106, %120 : vector<8x32xf32>
    %cst_64 = arith.constant 9.99999974E-6 : f32
    %122 = vector.broadcast %cst_64 : f32 to vector<8x1xf32>
    %123 = arith.addf %119, %122 : vector<8x1xf32>
    %124 = math.rsqrt %123 : vector<8x1xf32>
    %125 = vector.broadcast %124 : vector<8x1xf32> to vector<8x32xf32>
    %126 = arith.mulf %121, %125 : vector<8x32xf32>
    %127 = vector.broadcast %107 : vector<1x32xf32> to vector<8x32xf32>
    %128 = arith.mulf %126, %127 : vector<8x32xf32>
    %129 = vector.broadcast %108 : vector<1x32xf32> to vector<8x32xf32>
    %130 = arith.addf %128, %129 : vector<8x32xf32>
    %c0_65 = arith.constant 0 : index
    %c0_66 = arith.constant 0 : index
    %c0_67 = arith.constant 0 : index
    %131 = vector.load %arg17[%c0_65, %c0_66, %c0_67] : memref<1x8x32xf32, #tpu.memory_space<vmem>>, vector<1x8x32xf32>
    %132 = vector.shape_cast %131 : vector<1x8x32xf32> to vector<8x32xf32>
    %133 = vector.shape_cast %130 : vector<8x32xf32> to vector<1x8x32xf32>
    tpu.vector_store %arg17[%c0_65, %c0_66, %c0_67], %133 {strides = array<i32>} : memref<1x8x32xf32, #tpu.memory_space<vmem>>, vector<1x8x32xf32>,
    return
  }
  func.func @transform_0(%arg0: i32) -> (i32, i32, i32) {
    %c0_i32 = arith.constant 0 : i32
    %c0_i32_0 = arith.constant 0 : i32
    %c0_i32_1 = arith.constant 0 : i32
    return %arg0, %c0_i32, %c0_i32_0 : i32, i32, i32
  }
  func.func @transform_1(%arg0: i32) -> (i32, i32) {
    %c0_i32 = arith.constant 0 : i32
    %c0_i32_0 = arith.constant 0 : i32
    %c0_i32_1 = arith.constant 0 : i32
    return %c0_i32, %c0_i32_0 : i32, i32
  }
  func.func @transform_2(%arg0: i32) -> (i32, i32) {
    %c0_i32 = arith.constant 0 : i32
    %c0_i32_0 = arith.constant 0 : i32
    %c0_i32_1 = arith.constant 0 : i32
    return %c0_i32, %c0_i32_0 : i32, i32
  }
  func.func @transform_3(%arg0: i32) -> (i32, i32, i32) {
    %c0_i32 = arith.constant 0 : i32
    %c0_i32_0 = arith.constant 0 : i32
    %c0_i32_1 = arith.constant 0 : i32
    %c0_i32_2 = arith.constant 0 : i32
    return %c0_i32, %c0_i32_0, %c0_i32_1 : i32, i32, i32
  }
  func.func @transform_4(%arg0: i32) -> (i32, i32, i32) {
    %c0_i32 = arith.constant 0 : i32
    %c0_i32_0 = arith.constant 0 : i32
    %c0_i32_1 = arith.constant 0 : i32
    %c0_i32_2 = arith.constant 0 : i32
    return %c0_i32, %c0_i32_0, %c0_i32_1 : i32, i32, i32
  }
  func.func @transform_5(%arg0: i32) -> (i32, i32, i32) {
    %c0_i32 = arith.constant 0 : i32
    %c0_i32_0 = arith.constant 0 : i32
    %c0_i32_1 = arith.constant 0 : i32
    %c0_i32_2 = arith.constant 0 : i32
    return %c0_i32, %c0_i32_0, %c0_i32_1 : i32, i32, i32
  }
  func.func @transform_6(%arg0: i32) -> (i32, i32, i32) {
    %c0_i32 = arith.constant 0 : i32
    %c0_i32_0 = arith.constant 0 : i32
    %c0_i32_1 = arith.constant 0 : i32
    %c0_i32_2 = arith.constant 0 : i32
    return %c0_i32, %c0_i32_0, %c0_i32_1 : i32, i32, i32
  }
  func.func @transform_7(%arg0: i32) -> (i32, i32) {
    %c0_i32 = arith.constant 0 : i32
    %c0_i32_0 = arith.constant 0 : i32
    %c0_i32_1 = arith.constant 0 : i32
    return %c0_i32, %c0_i32_0 : i32, i32
  }
  func.func @transform_8(%arg0: i32) -> (i32, i32) {
    %c0_i32 = arith.constant 0 : i32
    %c0_i32_0 = arith.constant 0 : i32
    %c0_i32_1 = arith.constant 0 : i32
    return %c0_i32, %c0_i32_0 : i32, i32
  }
  func.func @transform_9(%arg0: i32) -> (i32, i32) {
    %c0_i32 = arith.constant 0 : i32
    %c0_i32_0 = arith.constant 0 : i32
    %c0_i32_1 = arith.constant 0 : i32
    return %c0_i32, %c0_i32_0 : i32, i32
  }
  func.func @transform_10(%arg0: i32) -> (i32, i32) {
    %c0_i32 = arith.constant 0 : i32
    %c0_i32_0 = arith.constant 0 : i32
    %c0_i32_1 = arith.constant 0 : i32
    return %c0_i32, %c0_i32_0 : i32, i32
  }
  func.func @transform_11(%arg0: i32) -> (i32, i32) {
    %c0_i32 = arith.constant 0 : i32
    %c0_i32_0 = arith.constant 0 : i32
    %c0_i32_1 = arith.constant 0 : i32
    return %c0_i32, %c0_i32_0 : i32, i32
  }
  func.func @transform_12(%arg0: i32) -> (i32, i32) {
    %c0_i32 = arith.constant 0 : i32
    %c0_i32_0 = arith.constant 0 : i32
    %c0_i32_1 = arith.constant 0 : i32
    return %c0_i32, %c0_i32_0 : i32, i32
  }
  func.func @transform_13(%arg0: i32) -> (i32, i32) {
    %c0_i32 = arith.constant 0 : i32
    %c0_i32_0 = arith.constant 0 : i32
    %c0_i32_1 = arith.constant 0 : i32
    return %c0_i32, %c0_i32_0 : i32, i32
  }
  func.func @transform_14(%arg0: i32) -> (i32, i32) {
    %c0_i32 = arith.constant 0 : i32
    %c0_i32_0 = arith.constant 0 : i32
    %c0_i32_1 = arith.constant 0 : i32
    return %c0_i32, %c0_i32_0 : i32, i32
  }
  func.func @transform_15(%arg0: i32) -> (i32, i32) {
    %c0_i32 = arith.constant 0 : i32
    %c0_i32_0 = arith.constant 0 : i32
    %c0_i32_1 = arith.constant 0 : i32
    return %c0_i32, %c0_i32_0 : i32, i32
  }
  func.func @transform_16(%arg0: i32) -> (i32, i32, i32) {
    %c0_i32 = arith.constant 0 : i32
    %c0_i32_0 = arith.constant 0 : i32
    %c0_i32_1 = arith.constant 0 : i32
    return %arg0, %c0_i32, %c0_i32_0 : i32, i32, i32
  }
}

</mosaic_0001>

<bundles_post_ra>
// kernel: transformer_forward.3
= control target key start
LH: loop header
LB: loop body
LE: loop exit
PB: predicated region body
PF: predicated region fallthrough
CT: control target
= control target key end

     0   :  { %s2235_s0 = inlined_call_operand.vmem [shape: f32[2,8,32], index: 0, kind: input, shape index: {}]   ;;  %s2236_s1 = inlined_call_operand.vmem [shape: f32[1,32], index: 1, kind: input, shape index: {}]   ;;  %s2237_s2 = inlined_call_operand.vmem [shape: f32[1,32], index: 2, kind: input, shape index: {}]   ;;  %s2238_s3 = inlined_call_operand.vmem [shape: bf16[4,32,16], index: 3, kind: input, shape index: {}]   ;;  %s2239_s4 = inlined_call_operand.vmem [shape: bf16[4,32,16], index: 4, kind: input, shape index: {}]   ;;  %s2240_s5 = inlined_call_operand.vmem [shape: bf16[4,32,16], index: 5, kind: input, shape index: {}]   ;;  %s2241_s6 = inlined_call_operand.vmem [shape: bf16[4,16,32], index: 6, kind: input, shape index: {}]   ;;  %s2242_s7 = inlined_call_operand.vmem [shape: f32[1,32], index: 7, kind: input, shape index: {}]   ;;  %s2243_s8 = inlined_call_operand.vmem [shape: f32[1,32], index: 8, kind: input, shape index: {}]   ;;  %s2244_s9 = inlined_call_operand.vmem [shape: f32[1,32], index: 9, kind: input, shape index: {}]   ;;  %s2245_s10 = inlined_call_operand.vmem [shape: bf16[32,64], index: 10, kind: input, shape index: {}]   ;;  %s2246_s11 = inlined_call_operand.vmem [shape: f32[1,64], index: 11, kind: input, shape index: {}]   ;;  %s2247_s12 = inlined_call_operand.vmem [shape: bf16[64,32], index: 12, kind: input, shape index: {}]   ;;  %s2248_s13 = inlined_call_operand.vmem [shape: f32[1,32], index: 13, kind: input, shape index: {}]   ;;  %s2249_s14 = inlined_call_operand.vmem [shape: f32[1,32], index: 14, kind: input, shape index: {}]   ;;  %s2250_s15 = inlined_call_operand.vmem [shape: f32[1,32], index: 15, kind: input, shape index: {}]   ;;  %s2251_s16 = inlined_call_operand.hbm [shape: f32[2,8,32], index: 16, kind: output, shape index: {}]  }
   0x1   :  { %2256 = sst [smem:[#allocation9_spill]] %s2235_s0 }
   0x2   :  { %2257 = sst [smem:[#allocation10_spill]] %s2236_s1 }
   0x3   :  { %2258 = sst [smem:[#allocation11_spill]] %s2237_s2 }
   0x4   :  { %21 = vsyncpa [#allocation3], 0 }
   0x5   :  { %23 = vsyncpa [#allocation3 + $0x1], 0  ;;  %s1951_s21 = smov 0   ;;  %s1953_s22 = smov 0  }
   0x6   :  { %s1955_s23 = smov 0   ;;  %s1957_s24 = smov 0  }
   0x7 LB: > { %2259 = sst [smem:[#allocation5_spill]] %s1859_s23  ;;  %s1972_s25 = sadd.s32 4294967295, %s1863_s24   ;;  %s1863_s24 = sphi %s1957_s24, %s2269_s24   ;;  %s1859_s23 = sphi %s1955_s23, %s2274_s23   ;;  %s1855_s22 = sphi %s1953_s22, %s2273_s22   ;;  %s1851_s21 = sphi %s1951_s21, %s2272_s21  }
   0x8   : > { %s1519_s26 = sadd.s32 4294967294, %s1863_s24   ;;  %s1976_s27 = sadd.s32 1, %s1863_s24  }
   0x9   : > { %2260 = sst [smem:[#allocation6_spill]] %s1976_s27  ;;  %s377_s28 = sadd.s32 1, %s1859_s23 }
   0xa   : > { %s374_s29 = ssub.s32 %s1863_s24, %s1976_s27  ;;  %p387_p0 = scmp.ne.s32.totalorder %s1859_s23, %s1855_s22 }
   0xb   : > { %p375_p1 = scmp.eq.s32.totalorder %s374_s29, 0  ;;  %p388_p2 = scmp.eq.s32.totalorder %s1972_s25, 1 }
   0xc   : > { %p393_p3 = scmp.ne.s32.totalorder %s1855_s22, %s1851_s21  ;;  %p394_p4 = scmp.eq.s32.totalorder %s1519_s26, 1 }
   0xd   : > { %s1987_s30 = scalar_select %p375_p1, %s1859_s23, %s377_s28  }
   0xe   : > { %p1989_p5 = por %p388_p2, %p387_p0  ;;  %p1993_p6 = por %p394_p4, %p393_p3 }
   0xf   : > { %2261 = sst [smem:[#allocation7_spill]] %s1987_s30  ;;  %p1522_p7 = scmp.ge.s32.totalorder %s1863_s24, 1 }
  0x10   : > { %s2263_s17 = scalar_select %p1993_p6, 1, 0 }
  0x11   : > { %p464_p8 = scmp.lt.s32.totalorder %s1863_s24, 3 }
  0x12   : > { %2264 = sst [smem:[#allocation8_spill]] %s2263_s17 }
  0x13   : > { %p465_p9 = pnand %p1522_p7, %p464_p8 }
  0x14   : > { %p513_p10 = scmp.lt.s32.totalorder (!%p465_p9), %s1972_s25, 1  ;;  %s2265_s28 = sld [smem:[#allocation9_spill]] (!%p465_p9) }
  0x15   : > { %468 = sbr.rel (%p465_p9) target bundleno = 1983 (0x7bf), region = 84  ;;  %s2266_s1 = sld [smem:[#allocation10_spill]] (!%p465_p9) }
  0x16   : > { %s2267_s2 = sld [smem:[#allocation11_spill]] (!%p465_p9)  ;;  %s510_s20 = sand.u32 (!%p465_p9), 1, %s1855_s22  }
  0x17   : > { %s1523_s26 = sshll.u32 (!%p465_p9), %s510_s20, 3 }
  0x1a   : > { %s514_s18 = scalar_select %p513_p10, %s1972_s25, 1  ;;  %vm521_vm0 = vcmask 261120   ;;  %v1865_v2 = vmov 32.0   ;;  %v1693_v14 = vld [vmem:[%s2238_s3 + $0x8] sm:$0xff]  ;;  %v1695_v15 = vld [vmem:[%s2238_s3 + $0x18] sm:$0xff]  ;;  %v1692_v18 = vld [vmem:[%s2238_s3] sm:$0xff] }
  0x1b   : > { %1775 = vrcp.f32 %v1865_v2  ;;  %v1697_v16 = vld [vmem:[%s2238_s3 + $0x28] sm:$0xff]  ;;  %v1699_v17 = vld [vmem:[%s2238_s3 + $0x38] sm:$0xff]  ;;  %597 = vmatpush.bf16.msra.mxu0 %v1693_v14  ;;  %622 = vmatpush.bf16.msra.mxu1 %v1695_v15  ;;  %v1694_v19 = vld [vmem:[%s2238_s3 + $0x10] sm:$0xff]  ;;  %vm919_vm5 = vcmask 130048   ;;  %vm1056_vm6 = vcmask 1043456   ;;  %vm1000_vm7 = vcmask 64512  }
  0x1c   : > { %s1524_s19 = sshll.u32 %s514_s18, 3  ;;  %647 = vmatpush.bf16.msra.mxu2 %v1697_v16  ;;  %672 = vmatpush.bf16.msra.mxu3 %v1699_v17  ;;  %v1696_v20 = vld [vmem:[%s2238_s3 + $0x20] sm:$0xff]  ;;  %v1698_v21 = vld [vmem:[%s2238_s3 + $0x30] sm:$0xff]  ;;  %v1701_v23 = vld [vmem:[%s2239_s4 + $0x8] sm:$0xff]  ;;  %vm1393_vm15 = vcmask 523264  }
  0x1d   : > { %s516_s29 = scalar_lea.vmem %s2265_s28, %s1524_s19  ;;  %v1703_v24 = vld [vmem:[%s2239_s4 + $0x18] sm:$0xff]  ;;  %v1705_v25 = vld [vmem:[%s2239_s4 + $0x28] sm:$0xff]  ;;  %v1700_v28 = vld [vmem:[%s2239_s4] sm:$0xff]  ;;  %s1689_s28 = sshll.u32 %s1972_s25, 3 }
  0x1e   : > { %v2004_v0 = vld [vmem:[%s516_s29] sm:$0xff]  ;;  %v1707_v27 = vld [vmem:[%s2239_s4 + $0x38] sm:$0xff]  ;;  %v1702_v29 = vld [vmem:[%s2239_s4 + $0x10] sm:$0xff]  ;;  %s1455_s17 = scalar_lea.hbm %s2251_s16, %s1689_s28  ;;  %s1445_s29 = scalar_lea.sflag [#allocation3], %s510_s20 }
  0x1f   : > { %v522_v1 = vsel %vm521_vm0, %v2004_v0, 0.0  ;;  %598 = vmatpush.bf16.msra.mxu0 %v1692_v18  ;;  %623 = vmatpush.bf16.msra.mxu1 %v1694_v19  ;;  %v1704_v31 = vld [vmem:[%s2239_s4 + $0x20] sm:$0xff]  ;;  %v1706_v32 = vld [vmem:[%s2239_s4 + $0x30] sm:$0xff]  ;;  %v1709_v46 = vld [vmem:[%s2240_s5 + $0x8] sm:$0xff] }
  0x20   : > { %523 = vadd.xlane.f32.xlu0 %v522_v1  ;;  %648 = vmatpush.bf16.msra.mxu2 %v1696_v20  ;;  %v1766_v39 = vld [vmem:[%s2266_s1] ss:$0 sm:$0xff]  ;;  %v1711_v47 = vld [vmem:[%s2240_s5 + $0x18] sm:$0xff]  ;;  %v1713_v48 = vld [vmem:[%s2240_s5 + $0x28] sm:$0xff]  ;;  %s512_s1 = scalar_lea.vmem [#allocation2], %s1523_s26  ;;  %s1821_s26 = scalar_lea.hbm %s2251_s16, 16 }
  0x21   : > { %v1776_v3 = vpop.eup %1775  ;;  %673 = vmatpush.bf16.msra.mxu3 %v1698_v21  ;;  %v1767_v41 = vld [vmem:[%s2267_s2] ss:$0 sm:$0xff]  ;;  %v1715_v49 = vld [vmem:[%s2240_s5 + $0x38] sm:$0xff]  ;;  %v1710_v51 = vld [vmem:[%s2240_s5 + $0x10] sm:$0xff]  ;;  %s1457_s25 = sshll.u32 %s512_s1, 4  ;;  %s1459_s2 = sshll.u32 %s1455_s17, 4  ;;  %s1458_s25 = int_to_ptr.vmem [resolvable:$true] %s1457_s25  ;;  %s1460_s2 = int_to_ptr.hbm [resolvable:$true] %s1459_s2 }
  0x22   : > { %v526_v4 = vmul.f32 32.0, %v1776_v3  ;;  %vm530_vm1 = vweird.f32 %v1776_v3  ;;  %v1708_v50 = vld [vmem:[%s2240_s5] sm:$0xff]  ;;  %v1714_v53 = vld [vmem:[%s2240_s5 + $0x30] sm:$0xff]  ;;  %s1815_s23 = sshra.s32 %s1460_s2, 4  ;;  %s1816_s23 = int_to_ptr.hbm [resolvable:$true] %s1815_s23 }
  0x23   : > { %713 = vmatpush.bf16.msrb.mxu0 %v1701_v23  ;;  %738 = vmatpush.bf16.msrb.mxu1 %v1703_v24  ;;  %v1712_v52 = vld [vmem:[%s2240_s5 + $0x20] sm:$0xff]  ;;  %s1817_s28 = scalar_lea.hbm %s1816_s23, 8  ;;  %p1822_p0 = scmp.lt.s32.totalorder %s1816_s23, %s2251_s16 }
  0x24   : > { %v527_v5 = vsub.f32 1.0, %v526_v4  ;;  %763 = vmatpush.bf16.msrb.mxu2 %v1705_v25  ;;  %p1818_p11 = scmp.ne.s32.totalorder %s1816_s23, %s1817_s28  ;;  %p1823_p1 = scmp.lt.s32.totalorder %s1821_s26, %s1817_s28 }
  0x25   : > { %788 = vmatpush.bf16.msrb.mxu3 %v1707_v27 }
  0x26   : > { %v528_v6 = vmul.f32 %v1776_v3, %v527_v5  ;;  %p1819_p12 = pnand %p1818_p11, %p1989_p5  ;;  %p1824_p2 = por %p1823_p1, %p1822_p0 }
  0x27   : > { %714 = vmatpush.bf16.msrb.mxu0 %v1700_v28  ;;  %739 = vmatpush.bf16.msrb.mxu1 %v1702_v29 }
  0x28   : > { %v529_v7 = vadd.f32 %v1776_v3, %v528_v6  ;;  %764 = vmatpush.bf16.msrb.mxu2 %v1704_v31  ;;  %p1820_p13 = pneg %p1819_p12 }
  0x29   : > { %789 = vmatpush.bf16.msrb.mxu3 %v1706_v32 }
  0x2a   : > { %v2008_v8 = vsel %vm530_vm1, %v1776_v3, %v529_v7  ;;  %p1825_p3 = pnand %p1824_p2, %p1820_p13 }
  0x93   : > { %v524_v9 = vpop.xlane.xlu0 %523 }
  0x94   : > { %v532_v10 = vmul.f32 %v2008_v8, %v524_v9 }
  0x96   : > { %v533_v11 = vsub.f32 %v2004_v0, %v532_v10 }
  0x98   : > { %v534_v12 = vmul.f32 %v533_v11, %v533_v11 }
  0x9a   : > { %v535_v13 = vsel %vm521_vm0, %v534_v12, 0.0 }
  0x9b   : > { %536 = vadd.xlane.f32.xlu0 %v535_v13 }
 0x10e   : > { %v537_v22 = vpop.xlane.xlu0 %536 }
 0x10f   : > { %v538_v26 = vmul.f32 %v537_v22, %v2008_v8 }
 0x111   : > { %v539_v30 = vadd.f32 1e-05, %v538_v26 }
 0x113   : > { %1777 = vrsqrt.f32 %v539_v30  ;;  %vm546_vm3 = vweird.f32 %v539_v30 }
 0x119   : > { %v1778_v33 = vpop.eup %1777 }
 0x11a   : > { %v541_v34 = vmul.f32 %v1778_v33, %v539_v30  ;;  %vm547_vm2 = vweird.f32 %v1778_v33 }
 0x11b   : > { %vm548_vm4 = vmor %vm546_vm3, %vm547_vm2 }
 0x11c   : > { %v542_v35 = vmul.f32 %v1778_v33, %v541_v34 }
 0x11e   : > { %v543_v36 = vmul.f32 0.5, %v542_v35 }
 0x120   : > { %v544_v37 = vsub.f32 1.5, %v543_v36 }
 0x122   : > { %v545_v38 = vmul.f32 %v1778_v33, %v544_v37 }
 0x124   : > { %v549_v40 = vsel %vm548_vm4, %v1778_v33, %v545_v38 }
 0x125   : > { %v550_v42 = vmul.f32 %v549_v40, %v533_v11 }
 0x127   : > { %v554_v43 = vmul.f32 %v1766_v39, %v550_v42 }
 0x129   : > { %v558_v44 = vadd.f32 %v1767_v41, %v554_v43 }
 0x12b   : > { %v559_v45 = vpack.c.bf16 %v558_v44, %v558_v44 }
 0x12d   : > { %1533 = vmatmul.msk.bf16.vlgmr.msra.gmra.mxu0 %vm521_vm0, %v559_v45  ;;  %1542 = vmatmul.msk.bf16.vlgmr.msra.gmra.mxu1 %vm521_vm0, %v559_v45 }
 0x12e   : > { %1551 = vmatmul.msk.bf16.vlgmr.msra.gmra.mxu2 %vm521_vm0, %v559_v45  ;;  %1560 = vmatmul.msk.bf16.vlgmr.msra.gmra.mxu3 %vm521_vm0, %v559_v45 }
 0x12f   : > { %829 = vmatpush.bf16.msra.mxu0 %v1709_v46  ;;  %854 = vmatpush.bf16.msra.mxu1 %v1711_v47 }
 0x130   : > { %879 = vmatpush.bf16.msra.mxu2 %v1713_v48  ;;  %904 = vmatpush.bf16.msra.mxu3 %v1715_v49 }
 0x133   : > { %830 = vmatpush.bf16.msra.mxu0 %v1708_v50  ;;  %855 = vmatpush.bf16.msra.mxu1 %v1710_v51 }
 0x134   : > { %880 = vmatpush.bf16.msra.mxu2 %v1712_v52  ;;  %905 = vmatpush.bf16.msra.mxu3 %v1714_v53 }
 0x13d   : > { %1569 = vmatmul.msk.bf16.vlgmr.msrb.gmra.mxu0 %vm521_vm0, %v559_v45  ;;  %1578 = vmatmul.msk.bf16.vlgmr.msrb.gmra.mxu1 %vm521_vm0, %v559_v45 }
 0x13e   : > { %1587 = vmatmul.msk.bf16.vlgmr.msrb.gmra.mxu2 %vm521_vm0, %v559_v45  ;;  %1596 = vmatmul.msk.bf16.vlgmr.msrb.gmra.mxu3 %vm521_vm0, %v559_v45 }
 0x14d   : > { %1605 = vmatmul.msk.bf16.vlgmr.msra.gmra.mxu0 %vm521_vm0, %v559_v45  ;;  %1614 = vmatmul.msk.bf16.vlgmr.msra.gmra.mxu1 %vm521_vm0, %v559_v45 }
 0x14e   : > { %1623 = vmatmul.msk.bf16.vlgmr.msra.gmra.mxu2 %vm521_vm0, %v559_v45  ;;  %1632 = vmatmul.msk.bf16.vlgmr.msra.gmra.mxu3 %vm521_vm0, %v559_v45 }
 0x1aa   : > { %v600_v54 = vpop.f32.mrf.mxu0  ;;  %v625_v55 = vpop.f32.mrf.mxu1 }
 0x1ab   : > { %v911_v12 = vpack.c.bf16 %v600_v54, %v600_v54  ;;  %v912_v13 = vpack.c.bf16 %v625_v55, %v625_v55 }
 0x1b1   : > { %v650_v56 = vpop.f32.mrf.mxu2  ;;  %v675_v57 = vpop.f32.mrf.mxu3 }
 0x1b2   : > { %v602_v58 = vpop.f32.mrf.mxu0  ;;  %v627_v59 = vpop.f32.mrf.mxu1  ;;  %v913_v18 = vpack.c.bf16 %v650_v56, %v650_v56  ;;  %v914_v19 = vpack.c.bf16 %v675_v57, %v675_v57 }
 0x1b9   : > { %v652_v60 = vpop.f32.mrf.mxu2  ;;  %v677_v61 = vpop.f32.mrf.mxu3 }
 0x1ba   : > { %v716_v62 = vpop.f32.mrf.mxu0  ;;  %v741_v63 = vpop.f32.mrf.mxu1 }
 0x1bb   : > { %v915_v1 = vpack.c.bf16 %v716_v62, %v716_v62  ;;  %v916_v2 = vpack.c.bf16 %v741_v63, %v741_v63 }
 0x1bd   : > { %v924_v3 = vsel %vm919_vm5, %v915_v1, 0  ;;  %v943_v4 = vsel %vm919_vm5, %v916_v2, 0 }
 0x1be   : > { %933 = vmatpush.bf16.xpose.msrb.mxu0 %v924_v3  ;;  %952 = vmatpush.bf16.xpose.msrb.mxu1 %v943_v4 }
 0x1c1   : > { %v766_v5 = vpop.f32.mrf.mxu2  ;;  %v791_v6 = vpop.f32.mrf.mxu3 }
 0x1c2   : > { %v917_v7 = vpack.c.bf16 %v766_v5, %v766_v5  ;;  %v918_v9 = vpack.c.bf16 %v791_v6, %v791_v6  ;;  %v718_v10 = vpop.f32.mrf.mxu0  ;;  %v743_v11 = vpop.f32.mrf.mxu1 }
 0x1c4   : > { %v962_v14 = vsel %vm919_vm5, %v917_v7, 0  ;;  %v981_v15 = vsel %vm919_vm5, %v918_v9, 0 }
 0x1c5   : > { %971 = vmatpush.bf16.xpose.msrb.mxu2 %v962_v14  ;;  %990 = vmatpush.bf16.xpose.msrb.mxu3 %v981_v15 }
 0x1c6   : > { %1633 = vmatmul.msk.bf16.vlgmr.msrb.gmra.mxu0 %vm919_vm5, %v911_v12  ;;  %1634 = vmatmul.msk.bf16.vlgmr.msrb.gmra.mxu1 %vm919_vm5, %v912_v13 }
 0x1c9   : > { %v768_v16 = vpop.f32.mrf.mxu2  ;;  %v793_v17 = vpop.f32.mrf.mxu3 }
 0x1ca   : > { %v832_v20 = vpop.f32.mrf.mxu0  ;;  %v857_v21 = vpop.f32.mrf.mxu1 }
 0x1cb   : > { %v1049_v22 = vpack.c.bf16 %v832_v20, %v832_v20  ;;  %v1050_v23 = vpack.c.bf16 %v857_v21, %v857_v21 }
 0x1cc   : > { %1635 = vmatmul.msk.bf16.vlgmr.msrb.gmra.mxu2 %vm919_vm5, %v913_v18  ;;  %1636 = vmatmul.msk.bf16.vlgmr.msrb.gmra.mxu3 %vm919_vm5, %v914_v19 }
 0x1cd   : > { %v1058_v24 = vsel %vm1056_vm6, %v1049_v22, 0  ;;  %v1077_v25 = vsel %vm1056_vm6, %v1050_v23, 0 }
 0x1ce   : > { %1067 = vmatpush.bf16.msra.mxu0 %v1058_v24  ;;  %1086 = vmatpush.bf16.msra.mxu1 %v1077_v25 }
 0x1d1   : > { %v882_v26 = vpop.f32.mrf.mxu2  ;;  %v907_v27 = vpop.f32.mrf.mxu3 }
 0x1d2   : > { %v1051_v28 = vpack.c.bf16 %v882_v26, %v882_v26  ;;  %v1052_v29 = vpack.c.bf16 %v907_v27, %v907_v27  ;;  %v834_v30 = vpop.f32.mrf.mxu0  ;;  %v859_v31 = vpop.f32.mrf.mxu1  ;;  %v1716_v26 = vld [vmem:[%s2241_s6] sm:$0xff]  ;;  %v1718_v27 = vld [vmem:[%s2241_s6 + $0x10] sm:$0xff] }
 0x1d3   : > { %1158 = vmatpush.bf16.msrb.mxu0 %v1716_v26 }
 0x1d4   : > { %v1096_v32 = vsel %vm1056_vm6, %v1051_v28, 0  ;;  %v1115_v33 = vsel %vm1056_vm6, %v1052_v29, 0  ;;  %v1717_v28 = vld [vmem:[%s2241_s6 + $0x8] sm:$0xff]  ;;  %v1719_v29 = vld [vmem:[%s2241_s6 + $0x18] sm:$0xff] }
 0x1d5   : > { %1105 = vmatpush.bf16.msra.mxu2 %v1096_v32  ;;  %1124 = vmatpush.bf16.msra.mxu3 %v1115_v33 }
 0x1d6   : > { %1180 = vmatpush.bf16.msrb.mxu1 %v1717_v28  ;;  %v1725_v28 = vld [vmem:[%s2247_s12 + $0x18] sm:$0xff] }
 0x1d9   : > { %v884_v34 = vpop.f32.mrf.mxu2  ;;  %v909_v35 = vpop.f32.mrf.mxu3  ;;  %1202 = vmatpush.bf16.msrb.mxu2 %v1718_v27  ;;  %1224 = vmatpush.bf16.msrb.mxu3 %v1719_v29 }
 0x243   : > { %v935_v36 = vpop.f32.mrf.mxu0  ;;  %v954_v37 = vpop.f32.mrf.mxu1 }
 0x244   : > { %v996_v38 = vmul.f32 0.25, %v935_v36  ;;  %v997_v40 = vmul.f32 0.25, %v954_v37 }
 0x246   : > { %v1001_v39 = vsel %vm1000_vm7, %v996_v38, -inf  ;;  %v1004_v43 = vsel %vm1000_vm7, %v997_v40, -inf }
 0x247   : > { %1002 = vmax.xlane.f32.xlu2 %v1001_v39 }
 0x24b   : > { %v937_v41 = vpop.f32.mrf.mxu0  ;;  %v956_v42 = vpop.f32.mrf.mxu1 }
 0x24f   : > { %v973_v44 = vpop.f32.mrf.mxu2  ;;  %v992_v45 = vpop.f32.mrf.mxu3  ;;  %1005 = vmax.xlane.f32.xlu2 %v1004_v43 }
 0x250   : > { %v998_v46 = vmul.f32 0.25, %v973_v44  ;;  %v999_v48 = vmul.f32 0.25, %v992_v45 }
 0x252   : > { %v1007_v47 = vsel %vm1000_vm7, %v998_v46, -inf  ;;  %v1010_v51 = vsel %vm1000_vm7, %v999_v48, -inf }
 0x253   : > { %1008 = vmax.xlane.f32.xlu1 %v1007_v47 }
 0x257   : > { %v975_v49 = vpop.f32.mrf.mxu2  ;;  %v994_v50 = vpop.f32.mrf.mxu3 }
 0x25b   : > { %1011 = vmax.xlane.f32.xlu1 %v1010_v51 }
 0x2ba   : > { %v1003_v52 = vpop.xlane.xlu2 %1002 }
 0x2bb   : > { %v1013_v53 = vsub.f32 %v996_v38, %v1003_v52 }
 0x2bd   : > { %v1017_v54 = vmul.f32 1.442695, %v1013_v53 }
 0x2bf   : > { %1779 = vpow2.f32 %v1017_v54 }
 0x2c2   : > { %v1006_v56 = vpop.xlane.xlu2 %1005 }
 0x2c3   : > { %v1014_v60 = vsub.f32 %v997_v40, %v1006_v56  ;;  %v1768_v56 = vld [vmem:[%s2242_s7] ss:$0 sm:$0xff] }
 0x2c5   : > { %v1780_v55 = vpop.eup %1779  ;;  %v1019_v62 = vmul.f32 1.442695, %v1014_v60 }
 0x2c6   : > { %v1009_v57 = vpop.xlane.xlu1 %1008  ;;  %v1025_v58 = vsel %vm1000_vm7, %v1780_v55, 0.0 }
 0x2c7   : > { %v1015_v59 = vsub.f32 %v998_v46, %v1009_v57  ;;  %1026 = vadd.xlane.f32.xlu2 %v1025_v58 }
 0x2c9   : > { %v1021_v61 = vmul.f32 1.442695, %v1015_v59 }
 0x2cb   : > { %1781 = vpow2.f32 %v1021_v61 }
 0x2cc   : > { %1783 = vpow2.f32 %v1019_v62 }
 0x2ce   : > { %v1012_v63 = vpop.xlane.xlu1 %1011 }
 0x2cf   : > { %v1016_v1 = vsub.f32 %v999_v48, %v1012_v63 }
 0x2d1   : > { %v1782_v2 = vpop.eup %1781  ;;  %v1023_v3 = vmul.f32 1.442695, %v1016_v1 }
 0x2d2   : > { %v1031_v4 = vsel %vm1000_vm7, %v1782_v2, 0.0  ;;  %v1784_v5 = vpop.eup %1783 }
 0x2d3   : > { %1785 = vpow2.f32 %v1023_v3  ;;  %1032 = vadd.xlane.f32.xlu0 %v1031_v4  ;;  %v1028_v9 = vsel %vm1000_vm7, %v1784_v5, 0.0  ;;  %v1720_v3 = vld [vmem:[%s2245_s10] sm:$0xff] }
 0x2d9   : > { %v1786_v6 = vpop.eup %1785 }
 0x2da   : > { %v1034_v7 = vsel %vm1000_vm7, %v1786_v6, 0.0 }
 0x2db   : > { %1035 = vadd.xlane.f32.xlu1 %v1034_v7  ;;  %1029 = vadd.xlane.f32.xlu0 %v1028_v9 }
 0x33a   : > { %v1027_v10 = vpop.xlane.xlu2 %1026 }
 0x33b   : > { %1787 = vrcp.f32 %v1027_v10 }
 0x341   : > { %v1788_v11 = vpop.eup %1787 }
 0x342   : > { %v1041_v12 = vmul.f32 %v1788_v11, %v1780_v55 }
 0x344   : > { %v1045_v13 = vpack.c.bf16 %v1041_v12, %v1041_v12 }
 0x346   : > { %v1033_v14 = vpop.xlane.xlu0 %1032  ;;  %1637 = vmatmul.msk.bf16.vlgmr.msra.gmra.mxu0 %vm1000_vm7, %v1045_v13 }
 0x347   : > { %1789 = vrcp.f32 %v1033_v14  ;;  %v1769_v14 = vld [vmem:[%s2243_s8] ss:$0 sm:$0xff] }
 0x34d   : > { %v1790_v15 = vpop.eup %1789 }
 0x34e   : > { %v1043_v16 = vmul.f32 %v1790_v15, %v1782_v2  ;;  %v1036_v17 = vpop.xlane.xlu1 %1035  ;;  %v1030_v18 = vpop.xlane.xlu0 %1029 }
 0x34f   : > { %1791 = vrcp.f32 %v1036_v17  ;;  %v1770_v17 = vld [vmem:[%s2244_s9] ss:$0 sm:$0xff] }
 0x350   : > { %v1047_v19 = vpack.c.bf16 %v1043_v16, %v1043_v16  ;;  %1793 = vrcp.f32 %v1030_v18 }
 0x352   : > { %1639 = vmatmul.msk.bf16.vlgmr.msra.gmra.mxu2 %vm1000_vm7, %v1047_v19 }
 0x355   : > { %v1792_v20 = vpop.eup %1791 }
 0x356   : > { %v1794_v21 = vpop.eup %1793  ;;  %v1044_v22 = vmul.f32 %v1792_v20, %v1786_v6 }
 0x357   : > { %v1042_v23 = vmul.f32 %v1794_v21, %v1784_v5  ;;  %v1771_v21 = vld [vmem:[%s2246_s11] ss:$0 sm:$0xff] }
 0x358   : > { %v1048_v24 = vpack.c.bf16 %v1044_v22, %v1044_v22 }
 0x359   : > { %v1046_v25 = vpack.c.bf16 %v1042_v23, %v1042_v23 }
 0x35a   : > { %1640 = vmatmul.msk.bf16.vlgmr.msra.gmra.mxu3 %vm1000_vm7, %v1048_v24 }
 0x35b   : > { %1638 = vmatmul.msk.bf16.vlgmr.msra.gmra.mxu1 %vm1000_vm7, %v1046_v25 }
 0x35c   : > { %1401 = vmatpush.bf16.msra.mxu1 %v1725_v28  ;;  %v1774_v28 = vld [vmem:[%s2250_s15] ss:$0 sm:$0xff] }
 0x3c3   : > { %v1069_v30 = vpop.f32.mrf.mxu0 }
 0x3c4   : > { %v1130_v31 = vpack.c.bf16 %v1069_v30, %v1069_v30 }
 0x3c6   : > { %1645 = vmatmul.msk.bf16.vlgmr.msrb.gmra.mxu0 %vm919_vm5, %v1130_v31 }
 0x3cb   : > { %v1071_v32 = vpop.f32.mrf.mxu0 }
 0x3d5   : > { %v1107_v33 = vpop.f32.mrf.mxu2 }
 0x3d6   : > { %v1132_v34 = vpack.c.bf16 %v1107_v33, %v1107_v33  ;;  %v1724_v33 = vld [vmem:[%s2247_s12 + $0x10] sm:$0xff] }
 0x3d7   : > { %1402 = vmatpush.bf16.msra.mxu1 %v1724_v33 }
 0x3d8   : > { %v1088_v35 = vpop.f32.mrf.mxu1  ;;  %1655 = vmatmul.msk.bf16.vlgmr.msrb.gmra.mxu2 %vm919_vm5, %v1132_v34 }
 0x3d9   : > { %v1131_v36 = vpack.c.bf16 %v1088_v35, %v1088_v35 }
 0x3db   : > { %1650 = vmatmul.msk.bf16.vlgmr.msrb.gmra.mxu1 %vm919_vm5, %v1131_v36 }
 0x3dd   : > { %v1109_v37 = vpop.f32.mrf.mxu2  ;;  %v1126_v38 = vpop.f32.mrf.mxu3 }
 0x3de   : > { %v1133_v39 = vpack.c.bf16 %v1126_v38, %v1126_v38  ;;  %v1723_v38 = vld [vmem:[%s2247_s12 + $0x8] sm:$0xff] }
 0x3df   : > { %1403 = vmatpush.bf16.msra.mxu1 %v1723_v38 }
 0x3e0   : > { %v1090_v40 = vpop.f32.mrf.mxu1  ;;  %1660 = vmatmul.msk.bf16.vlgmr.msrb.gmra.mxu3 %vm919_vm5, %v1133_v39 }
 0x3e5   : > { %v1128_v41 = vpop.f32.mrf.mxu3 }
 0x443   : > { %v1160_v42 = vpop.f32.mrf.mxu0 }
 0x444   : > { %v1230_v47 = vsel %vm521_vm0, %v1160_v42, 0.0  ;;  %v1722_v42 = vld [vmem:[%s2247_s12] sm:$0xff] }
 0x445   : > { %1404 = vmatpush.bf16.msra.mxu1 %v1722_v42 }
 0x44b   : > { %v1162_v43 = vpop.f32.mrf.mxu0 }
 0x458   : > { %v1182_v44 = vpop.f32.mrf.mxu1 }
 0x459   : > { %v1231_v46 = vsel %vm521_vm0, %v1182_v44, 0.0 }
 0x45a   : > { %v1232_v50 = vadd.f32 %v1231_v46, %v1230_v47 }
 0x45b   : > { %v1204_v45 = vpop.f32.mrf.mxu2 }
 0x45c   : > { %v1233_v48 = vsel %vm521_vm0, %v1204_v45, 0.0 }
 0x45d   : > { %v1234_v51 = vadd.f32 %v1233_v48, %v1232_v50 }
 0x460   : > { %v1184_v49 = vpop.f32.mrf.mxu1 }
 0x463   : > { %v1206_v52 = vpop.f32.mrf.mxu2  ;;  %v1226_v53 = vpop.f32.mrf.mxu3 }
 0x464   : > { %v1235_v54 = vsel %vm521_vm0, %v1226_v53, 0.0 }
 0x465   : > { %v1236_v55 = vadd.f32 %v1235_v54, %v1234_v51 }
 0x467   : > { %v1237_v57 = vadd.f32 %v1236_v55, %v2004_v0  ;;  %v1721_v0 = vld [vmem:[%s2245_s10 + $0x8] sm:$0xff] }
 0x468   : > { %1305 = vmatpush.bf16.msra.mxu0 %v1721_v0 }
 0x469   : > { %v2152_v58 = vadd.f32 %v1768_v56, %v1237_v57 }
 0x46b   : > { %v1228_v59 = vpop.f32.mrf.mxu3  ;;  %v1245_v60 = vsel %vm521_vm0, %v2152_v58, 0.0 }
 0x46c   : > { %1246 = vadd.xlane.f32.xlu1 %v1245_v60  ;;  %1306 = vmatpush.bf16.msra.mxu0 %v1720_v3 }
 0x4df   : > { %v1247_v61 = vpop.xlane.xlu1 %1246 }
 0x4e0   : > { %v1248_v62 = vmul.f32 %v1247_v61, %v2008_v8 }
 0x4e2   : > { %v1249_v63 = vsub.f32 %v2152_v58, %v1248_v62 }
 0x4e4   : > { %v1250_v1 = vmul.f32 %v1249_v63, %v1249_v63 }
 0x4e6   : > { %v1251_v2 = vsel %vm521_vm0, %v1250_v1, 0.0 }
 0x4e7   : > { %1252 = vadd.xlane.f32.xlu2 %v1251_v2 }
 0x55a   : > { %v1253_v4 = vpop.xlane.xlu2 %1252 }
 0x55b   : > { %v1254_v5 = vmul.f32 %v1253_v4, %v2008_v8 }
 0x55d   : > { %v1255_v6 = vadd.f32 1e-05, %v1254_v5 }
 0x55f   : > { %1795 = vrsqrt.f32 %v1255_v6  ;;  %vm1262_vm9 = vweird.f32 %v1255_v6 }
 0x565   : > { %v1796_v7 = vpop.eup %1795 }
 0x566   : > { %v1257_v9 = vmul.f32 %v1796_v7, %v1255_v6  ;;  %vm1263_vm8 = vweird.f32 %v1796_v7  ;;  %v1772_v6 = vld [vmem:[%s2248_s13] ss:$0 sm:$0xff] }
 0x567   : > { %vm1264_vm10 = vmor %vm1262_vm9, %vm1263_vm8 }
 0x568   : > { %v1258_v10 = vmul.f32 %v1796_v7, %v1257_v9 }
 0x56a   : > { %v1259_v11 = vmul.f32 0.5, %v1258_v10 }
 0x56c   : > { %v1260_v12 = vsub.f32 1.5, %v1259_v11 }
 0x56e   : > { %v1261_v13 = vmul.f32 %v1796_v7, %v1260_v12 }
 0x570   : > { %v1265_v15 = vsel %vm1264_vm10, %v1796_v7, %v1261_v13 }
 0x571   : > { %v1266_v16 = vmul.f32 %v1265_v15, %v1249_v63 }
 0x573   : > { %v1270_v18 = vmul.f32 %v1769_v14, %v1266_v16 }
 0x575   : > { %v1274_v19 = vadd.f32 %v1770_v17, %v1270_v18 }
 0x577   : > { %v1275_v20 = vpack.c.bf16 %v1274_v19, %v1274_v19 }
 0x579   : > { %1669 = vmatmul.msk.bf16.vlgmr.msra.gmra.mxu0 %vm521_vm0, %v1275_v20 }
 0x5f6   : > { %v1308_v22 = vpop.f32.mrf.mxu0 }
 0x5f7   : > { %v1309_v23 = vadd.f32 %v1771_v21, %v1308_v22 }
 0x5f9   : > { %v1313_v24 = vmul.f32 0.70710677, %v1309_v23  ;;  %v1312_v0 = vmul.f32 0.5, %v1309_v23 }
 0x5fb   : > { %v1314_v25 = vmul.f32 %v1313_v24, %v1313_v24 }
 0x5fd   : > { %v1315_v26 = vmin.f32 %v1314_v25, 16.0 }
 0x5fe   : > { %v1310_v27 = vpop.f32.mrf.mxu0 }
 0x5ff   : > { %v1316_v29 = vmul.f32 2.1237322e-06, %v1315_v26  ;;  %v1327_v30 = vmul.f32 3.8918573e-05, %v1315_v26 }
 0x601   : > { %v1317_v31 = vadd.f32 0.00028619796, %v1316_v29  ;;  %v1328_v32 = vadd.f32 0.001143296, %v1327_v30 }
 0x603   : > { %v1318_v34 = vmul.f32 %v1317_v31, %v1315_v26  ;;  %v1329_v35 = vmul.f32 %v1328_v32, %v1315_v26 }
 0x605   : > { %v1330_v36 = vadd.f32 0.014752088, %v1329_v35  ;;  %v1319_v37 = vadd.f32 0.0036580483, %v1318_v34 }
 0x607   : > { %v1331_v39 = vmul.f32 %v1330_v36, %v1315_v26  ;;  %v1320_v41 = vmul.f32 %v1319_v37, %v1315_v26 }
 0x609   : > { %v1332_v40 = vadd.f32 0.112945676, %v1331_v39  ;;  %v1321_v45 = vadd.f32 0.05243302, %v1320_v41 }
 0x60b   : > { %v1333_v43 = vmul.f32 %v1332_v40, %v1315_v26  ;;  %v1322_v48 = vmul.f32 %v1321_v45, %v1315_v26 }
 0x60d   : > { %v1334_v44 = vadd.f32 0.4994258, %v1333_v43  ;;  %v1323_v49 = vadd.f32 0.18741608, %v1322_v48 }
 0x60f   : > { %v1335_v46 = vmul.f32 %v1334_v44, %v1315_v26  ;;  %v1324_v51 = vmul.f32 %v1323_v49, %v1315_v26  ;;  %v1773_v26 = vld [vmem:[%s2249_s14] ss:$0 sm:$0xff] }
 0x611   : > { %v1336_v47 = vadd.f32 1.0, %v1335_v46  ;;  %v1325_v55 = vadd.f32 1.1283791, %v1324_v51 }
 0x613   : > { %1797 = vrcp.f32 %v1336_v47  ;;  %v1348_v54 = vand.u32 2147483648, %v1336_v47  ;;  %v1346_v57 = vand.u32 2147483647, %v1336_v47  ;;  %vm1342_vm12 = vweird.f32 %v1336_v47 }
 0x614   : > { %v1326_v61 = vmul.f32 %v1325_v55, %v1313_v24 }
 0x615   : > { %v1349_v60 = vor.u32 1.1754944e-38, %v1348_v54  ;;  %vm1347_vm14 = vcmp.eq.f32.partialorder %v1346_v57, 8.507059e+37 }
 0x619   : > { %v1798_v50 = vpop.eup %1797 }
 0x61a   : > { %v1338_v52 = vmul.f32 %v1798_v50, %v1336_v47  ;;  %vm1343_vm11 = vweird.f32 %v1798_v50 }
 0x61b   : > { %vm1344_vm13 = vmor %vm1342_vm12, %vm1343_vm11 }
 0x61c   : > { %v1339_v53 = vsub.f32 1.0, %v1338_v52 }
 0x61e   : > { %v1340_v56 = vmul.f32 %v1798_v50, %v1339_v53 }
 0x620   : > { %v1341_v59 = vadd.f32 %v1798_v50, %v1340_v56 }
 0x622   : > { %v1345_v62 = vsel %vm1344_vm13, %v1798_v50, %v1341_v59 }
 0x623   : > { %v1350_v63 = vsel %vm1347_vm14, %v1349_v60, %v1345_v62 }
 0x624   : > { %v1351_v1 = vmul.f32 %v1350_v63, %v1326_v61 }
 0x626   : > { %v1670_v2 = vclamps-f32 %v1351_v1, 1.0 }
 0x628   : > { %v1354_v3 = vadd.f32 1.0, %v1670_v2 }
 0x62a   : > { %v1355_v4 = vmul.f32 %v1354_v3, %v1312_v0 }
 0x62c   : > { %v1356_v5 = vpack.c.bf16 %v1355_v4, %v1355_v4 }
 0x62e   : > { %1687 = vmatmul.msk.bf16.vlgmr.msra.gmra.mxu1 %vm1393_vm15, %v1356_v5 }
 0x6ab   : > { %v1406_v7 = vpop.f32.mrf.mxu1 }
 0x6ac   : > { %v1407_v9 = vadd.f32 %v1772_v6, %v1406_v7 }
 0x6ae   : > { %v1410_v10 = vadd.f32 %v1407_v9, %v2152_v58 }
 0x6b0   : > { %v1413_v11 = vsel %vm521_vm0, %v1410_v10, 0.0 }
 0x6b1   : > { %1414 = vadd.xlane.f32.xlu0 %v1413_v11 }
 0x6b3   : > { %v1408_v12 = vpop.f32.mrf.mxu1 }
 0x724   : > { %v1415_v13 = vpop.xlane.xlu0 %1414 }
 0x725   : > { %v1416_v14 = vmul.f32 %v1415_v13, %v2008_v8 }
 0x727   : > { %v1417_v15 = vsub.f32 %v1410_v10, %v1416_v14 }
 0x729   : > { %v1418_v16 = vmul.f32 %v1417_v15, %v1417_v15 }
 0x72b   : > { %v1419_v17 = vsel %vm521_vm0, %v1418_v16, 0.0 }
 0x72c   : > { %1420 = vadd.xlane.f32.xlu1 %v1419_v17 }
 0x79f   : > { %v1421_v18 = vpop.xlane.xlu1 %1420 }
 0x7a0   : > { %v1422_v19 = vmul.f32 %v1421_v18, %v2008_v8 }
 0x7a2   : > { %v1423_v20 = vadd.f32 1e-05, %v1422_v19 }
 0x7a4   : > { %1799 = vrsqrt.f32 %v1423_v20  ;;  %vm1430_vm2 = vweird.f32 %v1423_v20 }
 0x7aa   : > { %v1800_v58 = vpop.eup %1799 }
 0x7ab   : > { %v1425_v21 = vmul.f32 %v1800_v58, %v1423_v20  ;;  %vm1431_vm1 = vweird.f32 %v1800_v58 }
 0x7ac   : > { %vm1432_vm3 = vmor %vm1430_vm2, %vm1431_vm1 }
 0x7ad   : > { %v1426_v22 = vmul.f32 %v1800_v58, %v1425_v21 }
 0x7af   : > { %v1427_v23 = vmul.f32 0.5, %v1426_v22 }
 0x7b1   : > { %v1428_v24 = vsub.f32 1.5, %v1427_v23 }
 0x7b3   : > { %v1429_v25 = vmul.f32 %v1800_v58, %v1428_v24 }
 0x7b5   : > { %v1433_v8 = vsel %vm1432_vm3, %v1800_v58, %v1429_v25 }
 0x7b6   : > { %v1434_v27 = vmul.f32 %v1433_v8, %v1417_v15 }
 0x7b8   : > { %v1438_v29 = vmul.f32 %v1773_v26, %v1434_v27 }
 0x7ba   : > { %v1442_v30 = vadd.f32 %v1774_v28, %v1438_v29 }
 0x7bc   : > { %1443 = vst.msk [vmem:[%s512_s1] sm:$0xff] %vm521_vm0, %v1442_v30 }
 0x7bd   : > { %1828 = shalt.err (!%p1825_p3)
}
 0x7be   : > { %1726 = dma.vmem_to_hbm [thread:$0]  (%p1989_p5), %s1458_s25, 128, %s1460_s2, %s1445_s29  }
 0x7bf PF: > { %p1732_p4 = scmp.ge.s32.totalorder %s1863_s24, 2  ;;  %s1471_s20 = sand.u32 1, %s1851_s21  }
 0x7c0   : > { %s1472_s19 = scalar_lea.sflag [#allocation3], %s1471_s20 }
 0x7c1   : > { %p1729_p7 = pnand %p1732_p4, %p1993_p6 }
 0x7c3   : > { %p1730_p8 = pneg %p1729_p7 }
 0x7c5   : > { %1846 = dma.done.wait (%p1730_p8), %s1472_s19, 128  }
 0x7c6   : > { %1848 = vsyncadd (%p1730_p8), %s1472_s19, 4294967168  ;;  %s2269_s24 = sld [smem:[#allocation6_spill]]  ;;  %s2272_s21 = smov %s1855_s22 }
 0x7c7   : > { %s2270_s23 = sld [smem:[#allocation5_spill]] }
 0x7c8   : > { %s2271_s28 = sld [smem:[#allocation7_spill]] }
 0x7cc   : > { %p26_p9 = scmp.ge.s32.totalorder %s2269_s24, 4  }
 0x7cd   : > { %s2273_s22 = smov %s2270_s23 }
 0x7ce   : > { %s2274_s23 = smov %s2271_s28  ;;  %28 = sbr.rel (!%p26_p9) target bundleno = 7 (0x7), region = 119 }
 0x7d3   :  { %1478 = vsyncpa [#allocation3], 1 }
 0x7d4   :  { %1480 = vsyncpa [#allocation3 + $0x1], 1 }

// kernel: transformer_forward.2
= control target key start
LH: loop header
LB: loop body
LE: loop exit
PB: predicated region body
PF: predicated region fallthrough
CT: control target
= control target key end

     0   :  { %s1805_s21 = smov 0   ;;  %s2018_s0 = inlined_call_operand.vmem [shape: f32[2,8,32], index: 0, kind: input, shape index: {}]   ;;  %s2019_s1 = inlined_call_operand.vmem [shape: f32[1,32], index: 1, kind: input, shape index: {}]   ;;  %s2020_s2 = inlined_call_operand.vmem [shape: f32[1,32], index: 2, kind: input, shape index: {}]   ;;  %s2021_s3 = inlined_call_operand.vmem [shape: bf16[4,32,16], index: 3, kind: input, shape index: {}]   ;;  %s2022_s4 = inlined_call_operand.vmem [shape: bf16[4,32,16], index: 4, kind: input, shape index: {}]   ;;  %s2023_s5 = inlined_call_operand.vmem [shape: bf16[4,32,16], index: 5, kind: input, shape index: {}]   ;;  %s2024_s6 = inlined_call_operand.vmem [shape: bf16[4,16,32], index: 6, kind: input, shape index: {}]   ;;  %s2025_s7 = inlined_call_operand.vmem [shape: f32[1,32], index: 7, kind: input, shape index: {}]   ;;  %s2026_s8 = inlined_call_operand.vmem [shape: f32[1,32], index: 8, kind: input, shape index: {}]   ;;  %s2027_s9 = inlined_call_operand.vmem [shape: f32[1,32], index: 9, kind: input, shape index: {}]   ;;  %s2028_s10 = inlined_call_operand.vmem [shape: bf16[32,64], index: 10, kind: input, shape index: {}]   ;;  %s2029_s11 = inlined_call_operand.vmem [shape: f32[1,64], index: 11, kind: input, shape index: {}]   ;;  %s2030_s12 = inlined_call_operand.vmem [shape: bf16[64,32], index: 12, kind: input, shape index: {}]   ;;  %s2031_s13 = inlined_call_operand.vmem [shape: f32[1,32], index: 13, kind: input, shape index: {}]   ;;  %s2032_s14 = inlined_call_operand.vmem [shape: f32[1,32], index: 14, kind: input, shape index: {}]   ;;  %s2033_s15 = inlined_call_operand.vmem [shape: f32[1,32], index: 15, kind: input, shape index: {}]   ;;  %s2034_s16 = inlined_call_operand.vmem [shape: f32[2,8,32], index: 16, kind: output, shape index: {}]  }
   0x1   :  { %2035 = sst [smem:[#allocation2_spill]] %s2018_s0 }
   0x2 LB: > { %s1465_s22 = sadd.s32 4294967295, %s1717_s21   ;;  %p1469_p0 = scmp.ge.s32.totalorder %s1717_s21, 1  ;;  %s1717_s21 = sphi %s1805_s21, %s26_s21  }
   0x3   : > { %p461_p1 = scmp.lt.s32.totalorder %s1717_s21, 3 }
   0x5   : > { %p462_p2 = pnand %p1469_p0, %p461_p1 }
   0x6   : > { %p509_p3 = scmp.lt.s32.totalorder (!%p462_p2), %s1465_s22, 1  ;;  %s2036_s24 = sld [smem:[#allocation2_spill]] (!%p462_p2) }
   0x7   : > { %465 = sbr.rel (%p462_p2) target bundleno = 1701 (0x6a5), region = 84 }
   0xc   : > { %s2038_s22 = smov (!%p509_p3, %s1465_s22), 1  ;;  %vm521_vm0 = vcmask 261120   ;;  %v1719_v2 = vmov 32.0   ;;  %v1638_v14 = vld [vmem:[%s2021_s3 + $0x8] sm:$0xff]  ;;  %v1640_v15 = vld [vmem:[%s2021_s3 + $0x18] sm:$0xff]  ;;  %v1637_v18 = vld [vmem:[%s2021_s3] sm:$0xff] }
   0xd   : > { %s1470_s14 = sshll.u32 %s2038_s22, 3  ;;  %1687 = vrcp.f32 %v1719_v2  ;;  %v1642_v16 = vld [vmem:[%s2021_s3 + $0x28] sm:$0xff]  ;;  %v1644_v17 = vld [vmem:[%s2021_s3 + $0x38] sm:$0xff]  ;;  %597 = vmatpush.bf16.msra.mxu0 %v1638_v14  ;;  %622 = vmatpush.bf16.msra.mxu1 %v1640_v15  ;;  %v1639_v19 = vld [vmem:[%s2021_s3 + $0x10] sm:$0xff]  ;;  %vm919_vm5 = vcmask 130048   ;;  %vm1056_vm6 = vcmask 1043456  }
   0xe   : > { %s512_s25 = scalar_lea.vmem %s2036_s24, %s1470_s14  ;;  %647 = vmatpush.bf16.msra.mxu2 %v1642_v16  ;;  %672 = vmatpush.bf16.msra.mxu3 %v1644_v17  ;;  %v1641_v20 = vld [vmem:[%s2021_s3 + $0x20] sm:$0xff]  ;;  %v1643_v21 = vld [vmem:[%s2021_s3 + $0x30] sm:$0xff]  ;;  %v1646_v23 = vld [vmem:[%s2022_s4 + $0x8] sm:$0xff]  ;;  %vm1000_vm7 = vcmask 64512   ;;  %vm1393_vm15 = vcmask 523264   ;;  %s516_s26 = scalar_lea.vmem %s2034_s16, %s1470_s14 }
   0xf   : > { %v1821_v0 = vld [vmem:[%s512_s25] sm:$0xff]  ;;  %v1648_v24 = vld [vmem:[%s2022_s4 + $0x18] sm:$0xff]  ;;  %v1650_v25 = vld [vmem:[%s2022_s4 + $0x28] sm:$0xff] }
  0x10   : > { %v522_v1 = vsel %vm521_vm0, %v1821_v0, 0.0  ;;  %v1652_v27 = vld [vmem:[%s2022_s4 + $0x38] sm:$0xff]  ;;  %v1645_v28 = vld [vmem:[%s2022_s4] sm:$0xff]  ;;  %v1647_v29 = vld [vmem:[%s2022_s4 + $0x10] sm:$0xff] }
  0x11   : > { %523 = vadd.xlane.f32.xlu0 %v522_v1  ;;  %598 = vmatpush.bf16.msra.mxu0 %v1637_v18  ;;  %v1649_v31 = vld [vmem:[%s2022_s4 + $0x20] sm:$0xff]  ;;  %v1651_v32 = vld [vmem:[%s2022_s4 + $0x30] sm:$0xff]  ;;  %v1654_v46 = vld [vmem:[%s2023_s5 + $0x8] sm:$0xff] }
  0x12   : > { %623 = vmatpush.bf16.msra.mxu1 %v1639_v19  ;;  %648 = vmatpush.bf16.msra.mxu2 %v1641_v20  ;;  %v1680_v39 = vld [vmem:[%s2019_s1] ss:$0 sm:$0xff]  ;;  %v1656_v47 = vld [vmem:[%s2023_s5 + $0x18] sm:$0xff]  ;;  %v1658_v48 = vld [vmem:[%s2023_s5 + $0x28] sm:$0xff] }
  0x13   : > { %v1688_v3 = vpop.eup %1687  ;;  %673 = vmatpush.bf16.msra.mxu3 %v1643_v21  ;;  %v1681_v41 = vld [vmem:[%s2020_s2] ss:$0 sm:$0xff]  ;;  %v1660_v49 = vld [vmem:[%s2023_s5 + $0x38] sm:$0xff]  ;;  %v1655_v51 = vld [vmem:[%s2023_s5 + $0x10] sm:$0xff] }
  0x14   : > { %v526_v4 = vmul.f32 32.0, %v1688_v3  ;;  %vm530_vm1 = vweird.f32 %v1688_v3  ;;  %v1653_v50 = vld [vmem:[%s2023_s5] sm:$0xff]  ;;  %v1659_v53 = vld [vmem:[%s2023_s5 + $0x30] sm:$0xff] }
  0x15   : > { %713 = vmatpush.bf16.msrb.mxu0 %v1646_v23  ;;  %v1657_v52 = vld [vmem:[%s2023_s5 + $0x20] sm:$0xff] }
  0x16   : > { %v527_v5 = vsub.f32 1.0, %v526_v4  ;;  %738 = vmatpush.bf16.msrb.mxu1 %v1648_v24  ;;  %763 = vmatpush.bf16.msrb.mxu2 %v1650_v25 }
  0x17   : > { %788 = vmatpush.bf16.msrb.mxu3 %v1652_v27 }
  0x18   : > { %v528_v6 = vmul.f32 %v1688_v3, %v527_v5 }
  0x19   : > { %714 = vmatpush.bf16.msrb.mxu0 %v1645_v28 }
  0x1a   : > { %v529_v7 = vadd.f32 %v1688_v3, %v528_v6  ;;  %739 = vmatpush.bf16.msrb.mxu1 %v1647_v29  ;;  %764 = vmatpush.bf16.msrb.mxu2 %v1649_v31 }
  0x1b   : > { %789 = vmatpush.bf16.msrb.mxu3 %v1651_v32 }
  0x1c   : > { %v1825_v8 = vsel %vm530_vm1, %v1688_v3, %v529_v7 }
  0x84   : > { %v524_v9 = vpop.xlane.xlu0 %523 }
  0x85   : > { %v532_v10 = vmul.f32 %v1825_v8, %v524_v9 }
  0x87   : > { %v533_v11 = vsub.f32 %v1821_v0, %v532_v10 }
  0x89   : > { %v534_v12 = vmul.f32 %v533_v11, %v533_v11 }
  0x8b   : > { %v535_v13 = vsel %vm521_vm0, %v534_v12, 0.0 }
  0x8c   : > { %536 = vadd.xlane.f32.xlu0 %v535_v13 }
  0xff   : > { %v537_v22 = vpop.xlane.xlu0 %536 }
 0x100   : > { %v538_v26 = vmul.f32 %v537_v22, %v1825_v8 }
 0x102   : > { %v539_v30 = vadd.f32 1e-05, %v538_v26 }
 0x104   : > { %1689 = vrsqrt.f32 %v539_v30  ;;  %vm546_vm3 = vweird.f32 %v539_v30 }
 0x10a   : > { %v1690_v33 = vpop.eup %1689 }
 0x10b   : > { %v541_v34 = vmul.f32 %v1690_v33, %v539_v30  ;;  %vm547_vm2 = vweird.f32 %v1690_v33 }
 0x10c   : > { %vm548_vm4 = vmor %vm546_vm3, %vm547_vm2 }
 0x10d   : > { %v542_v35 = vmul.f32 %v1690_v33, %v541_v34 }
 0x10f   : > { %v543_v36 = vmul.f32 0.5, %v542_v35 }
 0x111   : > { %v544_v37 = vsub.f32 1.5, %v543_v36 }
 0x113   : > { %v545_v38 = vmul.f32 %v1690_v33, %v544_v37 }
 0x115   : > { %v549_v40 = vsel %vm548_vm4, %v1690_v33, %v545_v38 }
 0x116   : > { %v550_v42 = vmul.f32 %v549_v40, %v533_v11 }
 0x118   : > { %v554_v43 = vmul.f32 %v1680_v39, %v550_v42 }
 0x11a   : > { %v558_v44 = vadd.f32 %v1681_v41, %v554_v43 }
 0x11c   : > { %v559_v45 = vpack.c.bf16 %v558_v44, %v558_v44 }
 0x11e   : > { %1480 = vmatmul.msk.bf16.vlgmr.msra.gmra.mxu0 %vm521_vm0, %v559_v45  ;;  %1489 = vmatmul.msk.bf16.vlgmr.msra.gmra.mxu1 %vm521_vm0, %v559_v45 }
 0x11f   : > { %1498 = vmatmul.msk.bf16.vlgmr.msra.gmra.mxu2 %vm521_vm0, %v559_v45  ;;  %1507 = vmatmul.msk.bf16.vlgmr.msra.gmra.mxu3 %vm521_vm0, %v559_v45 }
 0x120   : > { %829 = vmatpush.bf16.msra.mxu0 %v1654_v46  ;;  %854 = vmatpush.bf16.msra.mxu1 %v1656_v47 }
 0x121   : > { %879 = vmatpush.bf16.msra.mxu2 %v1658_v48  ;;  %904 = vmatpush.bf16.msra.mxu3 %v1660_v49 }
 0x124   : > { %830 = vmatpush.bf16.msra.mxu0 %v1653_v50  ;;  %855 = vmatpush.bf16.msra.mxu1 %v1655_v51 }
 0x125   : > { %880 = vmatpush.bf16.msra.mxu2 %v1657_v52  ;;  %905 = vmatpush.bf16.msra.mxu3 %v1659_v53 }
 0x12e   : > { %1516 = vmatmul.msk.bf16.vlgmr.msrb.gmra.mxu0 %vm521_vm0, %v559_v45  ;;  %1525 = vmatmul.msk.bf16.vlgmr.msrb.gmra.mxu1 %vm521_vm0, %v559_v45 }
 0x12f   : > { %1534 = vmatmul.msk.bf16.vlgmr.msrb.gmra.mxu2 %vm521_vm0, %v559_v45  ;;  %1543 = vmatmul.msk.bf16.vlgmr.msrb.gmra.mxu3 %vm521_vm0, %v559_v45 }
 0x13e   : > { %1552 = vmatmul.msk.bf16.vlgmr.msra.gmra.mxu0 %vm521_vm0, %v559_v45  ;;  %1561 = vmatmul.msk.bf16.vlgmr.msra.gmra.mxu1 %vm521_vm0, %v559_v45 }
 0x13f   : > { %1570 = vmatmul.msk.bf16.vlgmr.msra.gmra.mxu2 %vm521_vm0, %v559_v45  ;;  %1579 = vmatmul.msk.bf16.vlgmr.msra.gmra.mxu3 %vm521_vm0, %v559_v45 }
 0x19b   : > { %v600_v54 = vpop.f32.mrf.mxu0  ;;  %v625_v55 = vpop.f32.mrf.mxu1 }
 0x19c   : > { %v911_v12 = vpack.c.bf16 %v600_v54, %v600_v54  ;;  %v912_v13 = vpack.c.bf16 %v625_v55, %v625_v55 }
 0x1a2   : > { %v650_v56 = vpop.f32.mrf.mxu2  ;;  %v675_v57 = vpop.f32.mrf.mxu3 }
 0x1a3   : > { %v602_v58 = vpop.f32.mrf.mxu0  ;;  %v627_v59 = vpop.f32.mrf.mxu1  ;;  %v913_v18 = vpack.c.bf16 %v650_v56, %v650_v56  ;;  %v914_v19 = vpack.c.bf16 %v675_v57, %v675_v57 }
 0x1aa   : > { %v652_v60 = vpop.f32.mrf.mxu2  ;;  %v677_v61 = vpop.f32.mrf.mxu3 }
 0x1ab   : > { %v716_v62 = vpop.f32.mrf.mxu0  ;;  %v741_v63 = vpop.f32.mrf.mxu1 }
 0x1ac   : > { %v915_v1 = vpack.c.bf16 %v716_v62, %v716_v62  ;;  %v916_v2 = vpack.c.bf16 %v741_v63, %v741_v63 }
 0x1ae   : > { %v924_v3 = vsel %vm919_vm5, %v915_v1, 0  ;;  %v943_v4 = vsel %vm919_vm5, %v916_v2, 0 }
 0x1af   : > { %933 = vmatpush.bf16.xpose.msrb.mxu0 %v924_v3  ;;  %952 = vmatpush.bf16.xpose.msrb.mxu1 %v943_v4 }
 0x1b2   : > { %v766_v5 = vpop.f32.mrf.mxu2  ;;  %v791_v6 = vpop.f32.mrf.mxu3 }
 0x1b3   : > { %v917_v7 = vpack.c.bf16 %v766_v5, %v766_v5  ;;  %v918_v9 = vpack.c.bf16 %v791_v6, %v791_v6  ;;  %v718_v10 = vpop.f32.mrf.mxu0  ;;  %v743_v11 = vpop.f32.mrf.mxu1 }
 0x1b5   : > { %v962_v14 = vsel %vm919_vm5, %v917_v7, 0  ;;  %v981_v15 = vsel %vm919_vm5, %v918_v9, 0 }
 0x1b6   : > { %971 = vmatpush.bf16.xpose.msrb.mxu2 %v962_v14  ;;  %990 = vmatpush.bf16.xpose.msrb.mxu3 %v981_v15 }
 0x1b7   : > { %1580 = vmatmul.msk.bf16.vlgmr.msrb.gmra.mxu0 %vm919_vm5, %v911_v12  ;;  %1581 = vmatmul.msk.bf16.vlgmr.msrb.gmra.mxu1 %vm919_vm5, %v912_v13 }
 0x1ba   : > { %v768_v16 = vpop.f32.mrf.mxu2  ;;  %v793_v17 = vpop.f32.mrf.mxu3 }
 0x1bb   : > { %v832_v20 = vpop.f32.mrf.mxu0  ;;  %v857_v21 = vpop.f32.mrf.mxu1 }
 0x1bc   : > { %v1049_v22 = vpack.c.bf16 %v832_v20, %v832_v20  ;;  %v1050_v23 = vpack.c.bf16 %v857_v21, %v857_v21 }
 0x1bd   : > { %1582 = vmatmul.msk.bf16.vlgmr.msrb.gmra.mxu2 %vm919_vm5, %v913_v18  ;;  %1583 = vmatmul.msk.bf16.vlgmr.msrb.gmra.mxu3 %vm919_vm5, %v914_v19 }
 0x1be   : > { %v1058_v24 = vsel %vm1056_vm6, %v1049_v22, 0  ;;  %v1077_v25 = vsel %vm1056_vm6, %v1050_v23, 0 }
 0x1bf   : > { %1067 = vmatpush.bf16.msra.mxu0 %v1058_v24  ;;  %1086 = vmatpush.bf16.msra.mxu1 %v1077_v25 }
 0x1c2   : > { %v882_v26 = vpop.f32.mrf.mxu2  ;;  %v907_v27 = vpop.f32.mrf.mxu3 }
 0x1c3   : > { %v1051_v28 = vpack.c.bf16 %v882_v26, %v882_v26  ;;  %v1052_v29 = vpack.c.bf16 %v907_v27, %v907_v27  ;;  %v834_v30 = vpop.f32.mrf.mxu0  ;;  %v859_v31 = vpop.f32.mrf.mxu1  ;;  %v1661_v26 = vld [vmem:[%s2024_s6] sm:$0xff]  ;;  %v1663_v27 = vld [vmem:[%s2024_s6 + $0x10] sm:$0xff] }
 0x1c4   : > { %1158 = vmatpush.bf16.msrb.mxu0 %v1661_v26 }
 0x1c5   : > { %v1096_v32 = vsel %vm1056_vm6, %v1051_v28, 0  ;;  %v1115_v33 = vsel %vm1056_vm6, %v1052_v29, 0  ;;  %v1662_v28 = vld [vmem:[%s2024_s6 + $0x8] sm:$0xff]  ;;  %v1664_v29 = vld [vmem:[%s2024_s6 + $0x18] sm:$0xff] }
 0x1c6   : > { %1105 = vmatpush.bf16.msra.mxu2 %v1096_v32  ;;  %1124 = vmatpush.bf16.msra.mxu3 %v1115_v33 }
 0x1c7   : > { %1180 = vmatpush.bf16.msrb.mxu1 %v1662_v28 }
 0x1ca   : > { %v884_v34 = vpop.f32.mrf.mxu2  ;;  %v909_v35 = vpop.f32.mrf.mxu3  ;;  %1202 = vmatpush.bf16.msrb.mxu2 %v1663_v27  ;;  %1224 = vmatpush.bf16.msrb.mxu3 %v1664_v29  ;;  %v1670_v27 = vld [vmem:[%s2030_s12 + $0x18] sm:$0xff] }
 0x234   : > { %v935_v36 = vpop.f32.mrf.mxu0  ;;  %v954_v37 = vpop.f32.mrf.mxu1 }
 0x235   : > { %v996_v38 = vmul.f32 0.25, %v935_v36  ;;  %v997_v40 = vmul.f32 0.25, %v954_v37 }
 0x237   : > { %v1001_v39 = vsel %vm1000_vm7, %v996_v38, -inf  ;;  %v1004_v43 = vsel %vm1000_vm7, %v997_v40, -inf }
 0x238   : > { %1002 = vmax.xlane.f32.xlu2 %v1001_v39 }
 0x23c   : > { %v937_v41 = vpop.f32.mrf.mxu0  ;;  %v956_v42 = vpop.f32.mrf.mxu1 }
 0x240   : > { %v973_v44 = vpop.f32.mrf.mxu2  ;;  %v992_v45 = vpop.f32.mrf.mxu3  ;;  %1005 = vmax.xlane.f32.xlu2 %v1004_v43 }
 0x241   : > { %v998_v46 = vmul.f32 0.25, %v973_v44  ;;  %v999_v48 = vmul.f32 0.25, %v992_v45 }
 0x243   : > { %v1007_v47 = vsel %vm1000_vm7, %v998_v46, -inf  ;;  %v1010_v51 = vsel %vm1000_vm7, %v999_v48, -inf }
 0x244   : > { %1008 = vmax.xlane.f32.xlu1 %v1007_v47 }
 0x248   : > { %v975_v49 = vpop.f32.mrf.mxu2  ;;  %v994_v50 = vpop.f32.mrf.mxu3 }
 0x24c   : > { %1011 = vmax.xlane.f32.xlu1 %v1010_v51 }
 0x2ab   : > { %v1003_v52 = vpop.xlane.xlu2 %1002 }
 0x2ac   : > { %v1013_v53 = vsub.f32 %v996_v38, %v1003_v52 }
 0x2ae   : > { %v1017_v54 = vmul.f32 1.442695, %v1013_v53 }
 0x2b0   : > { %1691 = vpow2.f32 %v1017_v54 }
 0x2b3   : > { %v1006_v56 = vpop.xlane.xlu2 %1005 }
 0x2b4   : > { %v1014_v60 = vsub.f32 %v997_v40, %v1006_v56  ;;  %v1682_v56 = vld [vmem:[%s2025_s7] ss:$0 sm:$0xff] }
 0x2b6   : > { %v1692_v55 = vpop.eup %1691  ;;  %v1019_v62 = vmul.f32 1.442695, %v1014_v60 }
 0x2b7   : > { %v1009_v57 = vpop.xlane.xlu1 %1008  ;;  %v1025_v58 = vsel %vm1000_vm7, %v1692_v55, 0.0 }
 0x2b8   : > { %v1015_v59 = vsub.f32 %v998_v46, %v1009_v57  ;;  %1026 = vadd.xlane.f32.xlu2 %v1025_v58 }
 0x2ba   : > { %v1021_v61 = vmul.f32 1.442695, %v1015_v59 }
 0x2bc   : > { %1693 = vpow2.f32 %v1021_v61 }
 0x2bd   : > { %1695 = vpow2.f32 %v1019_v62 }
 0x2bf   : > { %v1012_v63 = vpop.xlane.xlu1 %1011 }
 0x2c0   : > { %v1016_v1 = vsub.f32 %v999_v48, %v1012_v63 }
 0x2c2   : > { %v1694_v2 = vpop.eup %1693  ;;  %v1023_v3 = vmul.f32 1.442695, %v1016_v1 }
 0x2c3   : > { %v1031_v4 = vsel %vm1000_vm7, %v1694_v2, 0.0  ;;  %v1696_v5 = vpop.eup %1695 }
 0x2c4   : > { %1697 = vpow2.f32 %v1023_v3  ;;  %1032 = vadd.xlane.f32.xlu0 %v1031_v4  ;;  %v1028_v9 = vsel %vm1000_vm7, %v1696_v5, 0.0  ;;  %v1665_v3 = vld [vmem:[%s2028_s10] sm:$0xff] }
 0x2ca   : > { %v1698_v6 = vpop.eup %1697 }
 0x2cb   : > { %v1034_v7 = vsel %vm1000_vm7, %v1698_v6, 0.0 }
 0x2cc   : > { %1035 = vadd.xlane.f32.xlu1 %v1034_v7  ;;  %1029 = vadd.xlane.f32.xlu0 %v1028_v9 }
 0x32b   : > { %v1027_v10 = vpop.xlane.xlu2 %1026 }
 0x32c   : > { %1699 = vrcp.f32 %v1027_v10 }
 0x332   : > { %v1700_v11 = vpop.eup %1699 }
 0x333   : > { %v1041_v12 = vmul.f32 %v1700_v11, %v1692_v55 }
 0x335   : > { %v1045_v13 = vpack.c.bf16 %v1041_v12, %v1041_v12 }
 0x337   : > { %v1033_v14 = vpop.xlane.xlu0 %1032  ;;  %1584 = vmatmul.msk.bf16.vlgmr.msra.gmra.mxu0 %vm1000_vm7, %v1045_v13 }
 0x338   : > { %1701 = vrcp.f32 %v1033_v14  ;;  %v1683_v14 = vld [vmem:[%s2026_s8] ss:$0 sm:$0xff] }
 0x33e   : > { %v1702_v15 = vpop.eup %1701 }
 0x33f   : > { %v1043_v16 = vmul.f32 %v1702_v15, %v1694_v2  ;;  %v1036_v17 = vpop.xlane.xlu1 %1035  ;;  %v1030_v18 = vpop.xlane.xlu0 %1029 }
 0x340   : > { %1703 = vrcp.f32 %v1036_v17 }
 0x341   : > { %v1047_v19 = vpack.c.bf16 %v1043_v16, %v1043_v16  ;;  %1705 = vrcp.f32 %v1030_v18 }
 0x343   : > { %1586 = vmatmul.msk.bf16.vlgmr.msra.gmra.mxu2 %vm1000_vm7, %v1047_v19 }
 0x346   : > { %v1704_v20 = vpop.eup %1703 }
 0x347   : > { %v1706_v21 = vpop.eup %1705  ;;  %v1044_v22 = vmul.f32 %v1704_v20, %v1698_v6  ;;  %v1685_v20 = vld [vmem:[%s2029_s11] ss:$0 sm:$0xff] }
 0x348   : > { %v1042_v23 = vmul.f32 %v1706_v21, %v1696_v5 }
 0x349   : > { %v1048_v24 = vpack.c.bf16 %v1044_v22, %v1044_v22 }
 0x34a   : > { %v1046_v25 = vpack.c.bf16 %v1042_v23, %v1042_v23 }
 0x34b   : > { %1587 = vmatmul.msk.bf16.vlgmr.msra.gmra.mxu3 %vm1000_vm7, %v1048_v24 }
 0x34c   : > { %1585 = vmatmul.msk.bf16.vlgmr.msra.gmra.mxu1 %vm1000_vm7, %v1046_v25 }
 0x34d   : > { %1401 = vmatpush.bf16.msra.mxu1 %v1670_v27 }
 0x3b4   : > { %v1069_v30 = vpop.f32.mrf.mxu0 }
 0x3b5   : > { %v1130_v31 = vpack.c.bf16 %v1069_v30, %v1069_v30 }
 0x3b7   : > { %1592 = vmatmul.msk.bf16.vlgmr.msrb.gmra.mxu0 %vm919_vm5, %v1130_v31 }
 0x3bc   : > { %v1071_v32 = vpop.f32.mrf.mxu0 }
 0x3bd   : > { %v1669_v32 = vld [vmem:[%s2030_s12 + $0x10] sm:$0xff] }
 0x3be   : > { %1402 = vmatpush.bf16.msra.mxu1 %v1669_v32 }
 0x3c6   : > { %v1107_v33 = vpop.f32.mrf.mxu2 }
 0x3c7   : > { %v1132_v34 = vpack.c.bf16 %v1107_v33, %v1107_v33 }
 0x3c9   : > { %v1088_v35 = vpop.f32.mrf.mxu1  ;;  %1602 = vmatmul.msk.bf16.vlgmr.msrb.gmra.mxu2 %vm919_vm5, %v1132_v34 }
 0x3ca   : > { %v1131_v36 = vpack.c.bf16 %v1088_v35, %v1088_v35 }
 0x3cc   : > { %1597 = vmatmul.msk.bf16.vlgmr.msrb.gmra.mxu1 %vm919_vm5, %v1131_v36 }
 0x3ce   : > { %v1109_v37 = vpop.f32.mrf.mxu2  ;;  %v1126_v38 = vpop.f32.mrf.mxu3 }
 0x3cf   : > { %v1133_v39 = vpack.c.bf16 %v1126_v38, %v1126_v38  ;;  %v1668_v37 = vld [vmem:[%s2030_s12 + $0x8] sm:$0xff] }
 0x3d0   : > { %1403 = vmatpush.bf16.msra.mxu1 %v1668_v37 }
 0x3d1   : > { %v1090_v40 = vpop.f32.mrf.mxu1  ;;  %1607 = vmatmul.msk.bf16.vlgmr.msrb.gmra.mxu3 %vm919_vm5, %v1133_v39 }
 0x3d6   : > { %v1128_v41 = vpop.f32.mrf.mxu3 }
 0x3d7   : > { %v1667_v41 = vld [vmem:[%s2030_s12] sm:$0xff] }
 0x3d8   : > { %1404 = vmatpush.bf16.msra.mxu1 %v1667_v41 }
 0x434   : > { %v1160_v42 = vpop.f32.mrf.mxu0 }
 0x435   : > { %v1230_v47 = vsel %vm521_vm0, %v1160_v42, 0.0 }
 0x43c   : > { %v1162_v43 = vpop.f32.mrf.mxu0 }
 0x449   : > { %v1182_v44 = vpop.f32.mrf.mxu1 }
 0x44a   : > { %v1231_v46 = vsel %vm521_vm0, %v1182_v44, 0.0 }
 0x44b   : > { %v1232_v50 = vadd.f32 %v1231_v46, %v1230_v47 }
 0x44c   : > { %v1204_v45 = vpop.f32.mrf.mxu2 }
 0x44d   : > { %v1233_v48 = vsel %vm521_vm0, %v1204_v45, 0.0 }
 0x44e   : > { %v1234_v51 = vadd.f32 %v1233_v48, %v1232_v50 }
 0x451   : > { %v1184_v49 = vpop.f32.mrf.mxu1 }
 0x454   : > { %v1206_v52 = vpop.f32.mrf.mxu2  ;;  %v1226_v53 = vpop.f32.mrf.mxu3 }
 0x455   : > { %v1235_v54 = vsel %vm521_vm0, %v1226_v53, 0.0 }
 0x456   : > { %v1236_v55 = vadd.f32 %v1235_v54, %v1234_v51 }
 0x458   : > { %v1237_v57 = vadd.f32 %v1236_v55, %v1821_v0  ;;  %v1666_v0 = vld [vmem:[%s2028_s10 + $0x8] sm:$0xff] }
 0x459   : > { %1305 = vmatpush.bf16.msra.mxu0 %v1666_v0 }
 0x45a   : > { %v1969_v58 = vadd.f32 %v1682_v56, %v1237_v57 }
 0x45c   : > { %v1228_v59 = vpop.f32.mrf.mxu3  ;;  %v1245_v60 = vsel %vm521_vm0, %v1969_v58, 0.0 }
 0x45d   : > { %1246 = vadd.xlane.f32.xlu1 %v1245_v60  ;;  %1306 = vmatpush.bf16.msra.mxu0 %v1665_v3 }
 0x4d0   : > { %v1247_v61 = vpop.xlane.xlu1 %1246 }
 0x4d1   : > { %v1248_v62 = vmul.f32 %v1247_v61, %v1825_v8 }
 0x4d3   : > { %v1249_v63 = vsub.f32 %v1969_v58, %v1248_v62 }
 0x4d5   : > { %v1250_v1 = vmul.f32 %v1249_v63, %v1249_v63 }
 0x4d7   : > { %v1251_v2 = vsel %vm521_vm0, %v1250_v1, 0.0 }
 0x4d8   : > { %1252 = vadd.xlane.f32.xlu2 %v1251_v2 }
 0x54b   : > { %v1253_v4 = vpop.xlane.xlu2 %1252 }
 0x54c   : > { %v1254_v5 = vmul.f32 %v1253_v4, %v1825_v8  ;;  %v1684_v8 = vld [vmem:[%s2027_s9] ss:$0 sm:$0xff] }
 0x54e   : > { %v1255_v6 = vadd.f32 1e-05, %v1254_v5  ;;  %v1686_v5 = vld [vmem:[%s2031_s13] ss:$0 sm:$0xff] }
 0x550   : > { %1707 = vrsqrt.f32 %v1255_v6  ;;  %vm1262_vm9 = vweird.f32 %v1255_v6 }
 0x556   : > { %v1708_v7 = vpop.eup %1707 }
 0x557   : > { %v1257_v9 = vmul.f32 %v1708_v7, %v1255_v6  ;;  %vm1263_vm8 = vweird.f32 %v1708_v7 }
 0x558   : > { %vm1264_vm10 = vmor %vm1262_vm9, %vm1263_vm8 }
 0x559   : > { %v1258_v10 = vmul.f32 %v1708_v7, %v1257_v9 }
 0x55b   : > { %v1259_v11 = vmul.f32 0.5, %v1258_v10 }
 0x55d   : > { %v1260_v12 = vsub.f32 1.5, %v1259_v11 }
 0x55f   : > { %v1261_v13 = vmul.f32 %v1708_v7, %v1260_v12 }
 0x561   : > { %v1265_v15 = vsel %vm1264_vm10, %v1708_v7, %v1261_v13 }
 0x562   : > { %v1266_v16 = vmul.f32 %v1265_v15, %v1249_v63 }
 0x564   : > { %v1270_v17 = vmul.f32 %v1683_v14, %v1266_v16 }
 0x566   : > { %v1274_v18 = vadd.f32 %v1684_v8, %v1270_v17 }
 0x568   : > { %v1275_v19 = vpack.c.bf16 %v1274_v18, %v1274_v18 }
 0x56a   : > { %1616 = vmatmul.msk.bf16.vlgmr.msra.gmra.mxu0 %vm521_vm0, %v1275_v19 }
 0x5e7   : > { %v1308_v21 = vpop.f32.mrf.mxu0 }
 0x5e8   : > { %v1309_v22 = vadd.f32 %v1685_v20, %v1308_v21 }
 0x5ea   : > { %v1313_v23 = vmul.f32 0.70710677, %v1309_v22  ;;  %v1312_v2 = vmul.f32 0.5, %v1309_v22 }
 0x5ec   : > { %v1314_v24 = vmul.f32 %v1313_v23, %v1313_v23 }
 0x5ee   : > { %v1315_v25 = vmin.f32 %v1314_v24, 16.0 }
 0x5ef   : > { %v1310_v26 = vpop.f32.mrf.mxu0 }
 0x5f0   : > { %v1316_v28 = vmul.f32 2.1237322e-06, %v1315_v25  ;;  %v1327_v29 = vmul.f32 3.8918573e-05, %v1315_v25 }
 0x5f2   : > { %v1317_v30 = vadd.f32 0.00028619796, %v1316_v28  ;;  %v1328_v31 = vadd.f32 0.001143296, %v1327_v29 }
 0x5f4   : > { %v1318_v33 = vmul.f32 %v1317_v30, %v1315_v25  ;;  %v1329_v34 = vmul.f32 %v1328_v31, %v1315_v25 }
 0x5f6   : > { %v1330_v35 = vadd.f32 0.014752088, %v1329_v34  ;;  %v1319_v36 = vadd.f32 0.0036580483, %v1318_v33 }
 0x5f8   : > { %v1331_v38 = vmul.f32 %v1330_v35, %v1315_v25  ;;  %v1320_v40 = vmul.f32 %v1319_v36, %v1315_v25 }
 0x5fa   : > { %v1332_v39 = vadd.f32 0.112945676, %v1331_v38  ;;  %v1321_v44 = vadd.f32 0.05243302, %v1320_v40 }
 0x5fc   : > { %v1333_v42 = vmul.f32 %v1332_v39, %v1315_v25  ;;  %v1322_v47 = vmul.f32 %v1321_v44, %v1315_v25 }
 0x5fe   : > { %v1334_v43 = vadd.f32 0.4994258, %v1333_v42  ;;  %v1323_v48 = vadd.f32 0.18741608, %v1322_v47 }
 0x600   : > { %v1335_v45 = vmul.f32 %v1334_v43, %v1315_v25  ;;  %v1324_v50 = vmul.f32 %v1323_v48, %v1315_v25 }
 0x602   : > { %v1336_v46 = vadd.f32 1.0, %v1335_v45  ;;  %v1325_v54 = vadd.f32 1.1283791, %v1324_v50 }
 0x604   : > { %1709 = vrcp.f32 %v1336_v46  ;;  %v1348_v53 = vand.u32 2147483648, %v1336_v46  ;;  %v1346_v56 = vand.u32 2147483647, %v1336_v46  ;;  %vm1342_vm12 = vweird.f32 %v1336_v46 }
 0x605   : > { %v1326_v60 = vmul.f32 %v1325_v54, %v1313_v23 }
 0x606   : > { %v1349_v59 = vor.u32 1.1754944e-38, %v1348_v53  ;;  %vm1347_vm14 = vcmp.eq.f32.partialorder %v1346_v56, 8.507059e+37 }
 0x60a   : > { %v1710_v49 = vpop.eup %1709 }
 0x60b   : > { %v1338_v51 = vmul.f32 %v1710_v49, %v1336_v46  ;;  %vm1343_vm11 = vweird.f32 %v1710_v49 }
 0x60c   : > { %vm1344_vm13 = vmor %vm1342_vm12, %vm1343_vm11 }
 0x60d   : > { %v1339_v52 = vsub.f32 1.0, %v1338_v51 }
 0x60f   : > { %v1340_v55 = vmul.f32 %v1710_v49, %v1339_v52 }
 0x611   : > { %v1341_v57 = vadd.f32 %v1710_v49, %v1340_v55 }
 0x613   : > { %v1345_v61 = vsel %vm1344_vm13, %v1710_v49, %v1341_v57 }
 0x614   : > { %v1350_v62 = vsel %vm1347_vm14, %v1349_v59, %v1345_v61 }
 0x615   : > { %v1351_v63 = vmul.f32 %v1350_v62, %v1326_v60 }
 0x617   : > { %v1617_v1 = vclamps-f32 %v1351_v63, 1.0 }
 0x619   : > { %v1354_v0 = vadd.f32 1.0, %v1617_v1 }
 0x61b   : > { %v1355_v3 = vmul.f32 %v1354_v0, %v1312_v2 }
 0x61d   : > { %v1356_v4 = vpack.c.bf16 %v1355_v3, %v1355_v3 }
 0x61f   : > { %1634 = vmatmul.msk.bf16.vlgmr.msra.gmra.mxu1 %vm1393_vm15, %v1356_v4 }
 0x69c   : > { %v1406_v6 = vpop.f32.mrf.mxu1 }
 0x69d   : > { %v1407_v7 = vadd.f32 %v1686_v5, %v1406_v6 }
 0x69f   : > { %v1410_v9 = vadd.f32 %v1407_v7, %v1969_v58 }
 0x6a1   : > { %1411 = vst.msk [vmem:[%s516_s26] sm:$0xff] %vm521_vm0, %v1410_v9 }
 0x6a4   : > { %v1408_v10 = vpop.f32.mrf.mxu1 }
 0x6a5 PF: > { %s26_s21 = sadd.s32 1, %s1717_s21  }
 0x6a6   : > { %p23_p4 = scmp.ge.s32.totalorder %s26_s21, 4  }
 0x6a8   :  { %25 = sbr.rel (!%p23_p4) target bundleno = 2 (0x2), region = 114 }

</bundles_post_ra>
